<compile_context>
chip_gen: v6e
topology: v6e:2x2x1
jax: 0.10.0
libtpu: 0.0.40
codegen_flags: <defaults>
</compile_context>

<pallas_src>
import math

import jax
import jax.numpy as jnp
from jax.experimental import pallas as pl
from jax.experimental.pallas import tpu as pltpu


_PADW = 8  # zero-pad width per side along W (8 keeps the sublane concat aligned)


# --------------------------------------------------------------------------
# Fused kernel: dl x (conv3x3 s(2,1) + foldedBN + ReLU)  ->  conv(4,1)
# --------------------------------------------------------------------------
def _make_seqconvs_kernel(dl, H, W, C):
    def kernel(*refs):
        if dl > 0:
            x_ref, w_ref, b_ref, wf_ref, o_ref = refs
        else:
            x_ref, wf_ref, o_ref = refs

        x = x_ref[0].astype(jnp.float32)  # (H, W, C) NHWC, VMEM-resident
        h = H
        Wp = W + 2 * _PADW

        for i in range(dl):  # dl is a trace-time constant -> static unroll
            ho = h // 2
            # Zero-pad W (aligned 8-wide blocks, sublane concat) and H (major-dim concat).
            zc = jnp.zeros((h, _PADW, C), jnp.float32)
            xw = jnp.concatenate([zc, x, zc], axis=1)           # (h, Wp, C)
            zr = jnp.zeros((1, Wp, C), jnp.float32)
            xp = jnp.concatenate([zr, xw, zr], axis=0)          # (h+2, Wp, C)
            # Even / odd padded rows without strided slicing (leading-dim reshape).
            xr = xp.reshape(ho + 1, 2, Wp, C)
            xe = xr[:, 0]                                       # padded rows 0,2,...,2ho
            xo = xr[:, 1]                                       # padded rows 1,3,...,2ho+1
            # im2col: kh taps on lanes (3C), then kw taps on lanes -> (ho, W, 9C).
            z = jnp.concatenate([xe[0:ho], xo[0:ho], xe[1:ho + 1]], axis=-1)
            cols = [
                jax.lax.slice(z, (0, _PADW - 1 + kw, 0),
                              (ho, _PADW - 1 + kw + W, 3 * C))
                for kw in range(3)
            ]
            patches = jnp.concatenate(cols, axis=-1)            # (ho, W, 9C)
            # conv (+ folded BN scale) as ONE MXU matmul with K = 9C, then bias + ReLU.
            y = jnp.dot(patches.reshape(ho * W, 9 * C), w_ref[i],
                        preferred_element_type=jnp.float32)
            y = jnp.maximum(y + b_ref[i], 0.0)
            x = y.reshape(ho, W, C)
            h = ho

        # Final (4,1) conv: present (4, W, C) as (W, 4C) @ (4C, C) -> K = 4C = 128.
        xf = jnp.concatenate([x[0], x[1], x[2], x[3]], axis=-1)  # (W, 4C)
        out = jnp.dot(xf, wf_ref[...], preferred_element_type=jnp.float32)
        o_ref[...] = out.reshape(1, 1, W, C).astype(o_ref.dtype)

    return kernel


def seqconvs_forward(x_nhwc, w_stack, b_stack, w_final):
    """x_nhwc: (N, H, W, C). Returns (N, 1, W, C)."""
    N, H, W, C = x_nhwc.shape
    dl = 0 if w_stack is None else w_stack.shape[0]
    assert H == 4 * (2 ** dl), (H, dl)

    kernel = _make_seqconvs_kernel(dl, H, W, C)

    in_specs = [pl.BlockSpec((1, H, W, C), lambda n: (n, 0, 0, 0))]
    args = [x_nhwc]
    if dl > 0:
        in_specs += [
            pl.BlockSpec((dl, 9 * C, C), lambda n: (0, 0, 0)),
            pl.BlockSpec((dl, 1, C), lambda n: (0, 0, 0)),
        ]
        args += [w_stack, b_stack]
    in_specs.append(pl.BlockSpec((4 * C, C), lambda n: (0, 0)))
    args.append(w_final)

    return pl.pallas_call(
        kernel,
        out_shape=jax.ShapeDtypeStruct((N, 1, W, C), x_nhwc.dtype),
        grid=(N,),
        in_specs=in_specs,
        out_specs=pl.BlockSpec((1, 1, W, C), lambda n: (n, 0, 0, 0)),
        compiler_params=pltpu.CompilerParams(dimension_semantics=("parallel",)),
    )(*args)


@jax.jit
def _forward_nchw(x_nchw, w_stack, b_stack, w_final):
    x = jnp.transpose(x_nchw, (0, 2, 3, 1))          # NCHW -> NHWC (once, tiny)
    y = seqconvs_forward(x, w_stack, b_stack, w_final)
    return jnp.transpose(y, (0, 3, 1, 2))            # NHWC -> NCHW


# --------------------------------------------------------------------------
# SeqConvs wrapper: deterministic parameter init + weight preprocessing
# (BN scale folding, im2col weight flattening).
# --------------------------------------------------------------------------
class SeqConvsPallas:
    def __init__(self, conv_dim, roi_size, key):
        height = roi_size[0]
        downsample_level = math.log2(height) - 2
        assert math.isclose(downsample_level, int(downsample_level))
        dl = int(downsample_level)
        C = conv_dim
        eps = 1e-5

        keys = jax.random.split(key, dl + 1)
        ws, bs, raw = [], [], []
        for i in range(dl):
            # kaiming_uniform_(a=1): bound = sqrt(3 / fan_in), fan_in = C*3*3
            fan_in = C * 3 * 3
            bound = math.sqrt(3.0 / fan_in)
            w = jax.random.uniform(keys[i], (3, 3, C, C), jnp.float32, -bound, bound)  # HWIO
            # fresh BatchNorm2d (eval): gamma=1, beta=0, running_mean=0, running_var=1
            gamma = jnp.ones((C,), jnp.float32)
            beta = jnp.zeros((C,), jnp.float32)
            running_mean = jnp.zeros((C,), jnp.float32)
            running_var = jnp.ones((C,), jnp.float32)
            scale = gamma / jnp.sqrt(running_var + eps)
            bias = beta - running_mean * scale
            w_folded = w * scale[None, None, None, :]           # fold BN scale into conv
            # Kernel im2col lane order is (kw, kh, ci) -> permute then flatten to (9C, C).
            w_flat = jnp.transpose(w_folded, (1, 0, 2, 3)).reshape(9 * C, C)
            ws.append(w_flat)
            bs.append(bias.reshape(1, C))
            raw.append((w, scale, bias))                        # kept for reference check

        self.dl = dl
        self.w_stack = jnp.stack(ws) if dl > 0 else None        # (dl, 9C, C)
        self.b_stack = jnp.stack(bs) if dl > 0 else None        # (dl, 1, C)
        self.raw_layers = raw

        # final Conv2d(C, C, (4,1), bias=False), PyTorch default bound 1/sqrt(fan_in)
        fan_in = C * 4 * 1
        bound = 1.0 / math.sqrt(fan_in)
        wf = jax.random.uniform(keys[dl], (4, C, C), jnp.float32, -bound, bound)  # (kh, ci, co)
        self.w_final_raw = wf
        self.w_final = wf.reshape(4 * C, C)                      # (4C, C)

    def __call__(self, x_nchw):
        return _forward_nchw(x_nchw, self.w_stack, self.b_stack, self.w_final)


# --------------------------------------------------------------------------
# Pure-JAX reference (same eval-mode semantics) for a correctness check.
# --------------------------------------------------------------------------
def _reference_forward(x_nchw, raw_layers, w_final_raw):
    x = x_nchw
    for w_hwio, scale, bias in raw_layers:
        w_oihw = jnp.transpose(w_hwio, (3, 2, 0, 1))
        x = jax.lax.conv_general_dilated(
            x, w_oihw, window_strides=(2, 1), padding=((1, 1), (1, 1)),
            dimension_numbers=("NCHW", "OIHW", "NCHW"))
        x = x * scale[None, :, None, None] + bias[None, :, None, None]
        x = jnp.maximum(x, 0.0)
    wf_oihw = jnp.transpose(w_final_raw, (2, 1, 0))[..., None]   # (co, ci, 4, 1)
    return jax.lax.conv_general_dilated(
        x, wf_oihw, window_strides=(1, 1), padding=((0, 0), (0, 0)),
        dimension_numbers=("NCHW", "OIHW", "NCHW"))


if __name__ == "__main__":
    key = jax.random.PRNGKey(0)
    k_x, k_p = jax.random.split(key)

    conv_dim = 32
    roi_size = (16, 16)      # height=16 -> downsample_level = 2
    N, W = 2, 16

    x = jax.random.normal(k_x, (N, conv_dim, roi_size[0], W), jnp.float32)  # NCHW

    model = SeqConvsPallas(conv_dim, roi_size, k_p)
    out = jax.block_until_ready(model(x))

    assert out.shape == (N, conv_dim, 1, W), out.shape
    assert jnp.all(jnp.isfinite(out))

    ref = _reference_forward(x, model.raw_layers, model.w_final_raw)
    assert jnp.allclose(out, ref, atol=2e-4, rtol=2e-4), float(jnp.max(jnp.abs(out - ref)))

    print("KERNEL_OK")
</pallas_src>

<mosaic_0001>
module attributes {stable_mosaic.version = 11 : i64} {
  func.func @kernel(%arg0: i32, %arg1: memref<1x16x16x32xf32, #tpu.memory_space<vmem>>, %arg2: memref<2x288x32xf32, #tpu.memory_space<vmem>>, %arg3: memref<2x1x32xf32, #tpu.memory_space<vmem>>, %arg4: memref<128x32xf32, #tpu.memory_space<vmem>>, %arg5: memref<1x1x16x32xf32, #tpu.memory_space<vmem>>) attributes {dimension_semantics = [#tpu.dimension_semantics<parallel>], iteration_bounds = array<i64: 2>, scalar_prefetch = 0 : i64, scratch_operands = 0 : i64, tpu.core_type = #tpu.core_type<tc>, window_params = [{transform_indices = @transform_0, window_bounds = array<i64: 1, 16, 16, 32>}, {pipeline_mode = #tpu.pipeline_mode<synchronous>, transform_indices = @transform_1, window_bounds = array<i64: 2, 288, 32>}, {pipeline_mode = #tpu.pipeline_mode<synchronous>, transform_indices = @transform_2, window_bounds = array<i64: 2, 1, 32>}, {pipeline_mode = #tpu.pipeline_mode<synchronous>, transform_indices = @transform_3, window_bounds = array<i64: 128, 32>}, {transform_indices = @transform_4, window_bounds = array<i64: 1, 1, 16, 32>}]} {
    %c0 = arith.constant 0 : index
    %c0_0 = arith.constant 0 : index
    %c0_1 = arith.constant 0 : index
    %c0_2 = arith.constant 0 : index
    %0 = vector.load %arg1[%c0, %c0_0, %c0_1, %c0_2] : memref<1x16x16x32xf32, #tpu.memory_space<vmem>>, vector<1x16x16x32xf32>
    %1 = vector.shape_cast %0 : vector<1x16x16x32xf32> to vector<16x16x32xf32>
    %cst = arith.constant 0.000000e+00 : f32
    %2 = vector.broadcast %cst : f32 to vector<16x8x32xf32>
    %3 = tpu.concatenate %2, %1, %2 in 1 : vector<16x8x32xf32>, vector<16x16x32xf32>, vector<16x8x32xf32> -> vector<16x32x32xf32>
    %cst_3 = arith.constant 0.000000e+00 : f32
    %4 = vector.broadcast %cst_3 : f32 to vector<1x32x32xf32>
    %5 = tpu.concatenate %4, %3, %4 in 0 : vector<1x32x32xf32>, vector<16x32x32xf32>, vector<1x32x32xf32> -> vector<18x32x32xf32>
    %6 = vector.shape_cast %5 : vector<18x32x32xf32> to vector<9x2x32x32xf32>
    %7 = vector.extract_strided_slice %6 {offsets = [0, 0, 0, 0], sizes = [9, 1, 32, 32], strides = [1, 1, 1, 1]} : vector<9x2x32x32xf32> to vector<9x1x32x32xf32>
    %8 = vector.shape_cast %7 : vector<9x1x32x32xf32> to vector<9x32x32xf32>
    %9 = vector.extract_strided_slice %6 {offsets = [0, 1, 0, 0], sizes = [9, 1, 32, 32], strides = [1, 1, 1, 1]} : vector<9x2x32x32xf32> to vector<9x1x32x32xf32>
    %10 = vector.shape_cast %9 : vector<9x1x32x32xf32> to vector<9x32x32xf32>
    %11 = vector.extract_strided_slice %8 {offsets = [0, 0, 0], sizes = [8, 32, 32], strides = [1, 1, 1]} : vector<9x32x32xf32> to vector<8x32x32xf32>
    %12 = vector.extract_strided_slice %10 {offsets = [0, 0, 0], sizes = [8, 32, 32], strides = [1, 1, 1]} : vector<9x32x32xf32> to vector<8x32x32xf32>
    %13 = vector.extract_strided_slice %8 {offsets = [1, 0, 0], sizes = [8, 32, 32], strides = [1, 1, 1]} : vector<9x32x32xf32> to vector<8x32x32xf32>
    %14 = tpu.concatenate %11, %12, %13 in 2 : vector<8x32x32xf32>, vector<8x32x32xf32>, vector<8x32x32xf32> -> vector<8x32x96xf32>
    %15 = vector.extract_strided_slice %14 {offsets = [0, 7, 0], sizes = [8, 16, 96], strides = [1, 1, 1]} : vector<8x32x96xf32> to vector<8x16x96xf32>
    %16 = vector.extract_strided_slice %14 {offsets = [0, 8, 0], sizes = [8, 16, 96], strides = [1, 1, 1]} : vector<8x32x96xf32> to vector<8x16x96xf32>
    %17 = vector.extract_strided_slice %14 {offsets = [0, 9, 0], sizes = [8, 16, 96], strides = [1, 1, 1]} : vector<8x32x96xf32> to vector<8x16x96xf32>
    %18 = tpu.concatenate %15, %16, %17 in 2 : vector<8x16x96xf32>, vector<8x16x96xf32>, vector<8x16x96xf32> -> vector<8x16x288xf32>
    %19 = vector.shape_cast %18 : vector<8x16x288xf32> to vector<128x288xf32>
    %c0_4 = arith.constant 0 : index
    %c0_5 = arith.constant 0 : index
    %c0_6 = arith.constant 0 : index
    %20 = vector.load %arg2[%c0_4, %c0_5, %c0_6] : memref<2x288x32xf32, #tpu.memory_space<vmem>>, vector<1x288x32xf32>
    %21 = vector.shape_cast %20 : vector<1x288x32xf32> to vector<288x32xf32>
    %cst_7 = arith.constant dense<0.000000e+00> : vector<128x32xf32>
    %22 = tpu.matmul %19, %21, %cst_7 {dimension_numbers = #tpu.dot_dimension_numbers<[1], [0], [0], [1], [0, 0, 1, 1], [], []>} : vector<128x288xf32>, vector<288x32xf32>, vector<128x32xf32> -> vector<128x32xf32>
    %c0_8 = arith.constant 0 : index
    %c0_9 = arith.constant 0 : index
    %c0_10 = arith.constant 0 : index
    %23 = vector.load %arg3[%c0_8, %c0_9, %c0_10] : memref<2x1x32xf32, #tpu.memory_space<vmem>>, vector<1x1x32xf32>
    %24 = vector.shape_cast %23 : vector<1x1x32xf32> to vector<1x32xf32>
    %25 = vector.broadcast %24 : vector<1x32xf32> to vector<128x32xf32>
    %26 = arith.addf %22, %25 : vector<128x32xf32>
    %cst_11 = arith.constant 0.000000e+00 : f32
    %27 = vector.broadcast %cst_11 : f32 to vector<128x32xf32>
    %28 = arith.maximumf %26, %27 : vector<128x32xf32>
    %29 = vector.shape_cast %28 : vector<128x32xf32> to vector<8x16x32xf32>
    %cst_12 = arith.constant 0.000000e+00 : f32
    %30 = vector.broadcast %cst_12 : f32 to vector<8x8x32xf32>
    %31 = tpu.concatenate %30, %29, %30 in 1 : vector<8x8x32xf32>, vector<8x16x32xf32>, vector<8x8x32xf32> -> vector<8x32x32xf32>
    %cst_13 = arith.constant 0.000000e+00 : f32
    %32 = vector.broadcast %cst_13 : f32 to vector<1x32x32xf32>
    %33 = tpu.concatenate %32, %31, %32 in 0 : vector<1x32x32xf32>, vector<8x32x32xf32>, vector<1x32x32xf32> -> vector<10x32x32xf32>
    %34 = vector.shape_cast %33 : vector<10x32x32xf32> to vector<5x2x32x32xf32>
    %35 = vector.extract_strided_slice %34 {offsets = [0, 0, 0, 0], sizes = [5, 1, 32, 32], strides = [1, 1, 1, 1]} : vector<5x2x32x32xf32> to vector<5x1x32x32xf32>
    %36 = vector.shape_cast %35 : vector<5x1x32x32xf32> to vector<5x32x32xf32>
    %37 = vector.extract_strided_slice %34 {offsets = [0, 1, 0, 0], sizes = [5, 1, 32, 32], strides = [1, 1, 1, 1]} : vector<5x2x32x32xf32> to vector<5x1x32x32xf32>
    %38 = vector.shape_cast %37 : vector<5x1x32x32xf32> to vector<5x32x32xf32>
    %39 = vector.extract_strided_slice %36 {offsets = [0, 0, 0], sizes = [4, 32, 32], strides = [1, 1, 1]} : vector<5x32x32xf32> to vector<4x32x32xf32>
    %40 = vector.extract_strided_slice %38 {offsets = [0, 0, 0], sizes = [4, 32, 32], strides = [1, 1, 1]} : vector<5x32x32xf32> to vector<4x32x32xf32>
    %41 = vector.extract_strided_slice %36 {offsets = [1, 0, 0], sizes = [4, 32, 32], strides = [1, 1, 1]} : vector<5x32x32xf32> to vector<4x32x32xf32>
    %42 = tpu.concatenate %39, %40, %41 in 2 : vector<4x32x32xf32>, vector<4x32x32xf32>, vector<4x32x32xf32> -> vector<4x32x96xf32>
    %43 = vector.extract_strided_slice %42 {offsets = [0, 7, 0], sizes = [4, 16, 96], strides = [1, 1, 1]} : vector<4x32x96xf32> to vector<4x16x96xf32>
    %44 = vector.extract_strided_slice %42 {offsets = [0, 8, 0], sizes = [4, 16, 96], strides = [1, 1, 1]} : vector<4x32x96xf32> to vector<4x16x96xf32>
    %45 = vector.extract_strided_slice %42 {offsets = [0, 9, 0], sizes = [4, 16, 96], strides = [1, 1, 1]} : vector<4x32x96xf32> to vector<4x16x96xf32>
    %46 = tpu.concatenate %43, %44, %45 in 2 : vector<4x16x96xf32>, vector<4x16x96xf32>, vector<4x16x96xf32> -> vector<4x16x288xf32>
    %47 = vector.shape_cast %46 : vector<4x16x288xf32> to vector<64x288xf32>
    %c1 = arith.constant 1 : index
    %c0_14 = arith.constant 0 : index
    %c0_15 = arith.constant 0 : index
    %48 = vector.load %arg2[%c1, %c0_14, %c0_15] : memref<2x288x32xf32, #tpu.memory_space<vmem>>, vector<1x288x32xf32>
    %49 = vector.shape_cast %48 : vector<1x288x32xf32> to vector<288x32xf32>
    %cst_16 = arith.constant dense<0.000000e+00> : vector<64x32xf32>
    %50 = tpu.matmul %47, %49, %cst_16 {dimension_numbers = #tpu.dot_dimension_numbers<[1], [0], [0], [1], [0, 0, 1, 1], [], []>} : vector<64x288xf32>, vector<288x32xf32>, vector<64x32xf32> -> vector<64x32xf32>
    %c1_17 = arith.constant 1 : index
    %c0_18 = arith.constant 0 : index
    %c0_19 = arith.constant 0 : index
    %51 = vector.load %arg3[%c1_17, %c0_18, %c0_19] : memref<2x1x32xf32, #tpu.memory_space<vmem>>, vector<1x1x32xf32>
    %52 = vector.shape_cast %51 : vector<1x1x32xf32> to vector<1x32xf32>
    %53 = vector.broadcast %52 : vector<1x32xf32> to vector<64x32xf32>
    %54 = arith.addf %50, %53 : vector<64x32xf32>
    %cst_20 = arith.constant 0.000000e+00 : f32
    %55 = vector.broadcast %cst_20 : f32 to vector<64x32xf32>
    %56 = arith.maximumf %54, %55 : vector<64x32xf32>
    %57 = vector.shape_cast %56 : vector<64x32xf32> to vector<4x16x32xf32>
    %58 = vector.extract_strided_slice %57 {offsets = [0, 0, 0], sizes = [1, 16, 32], strides = [1, 1, 1]} : vector<4x16x32xf32> to vector<1x16x32xf32>
    %59 = vector.shape_cast %58 : vector<1x16x32xf32> to vector<16x32xf32>
    %60 = vector.extract_strided_slice %57 {offsets = [1, 0, 0], sizes = [1, 16, 32], strides = [1, 1, 1]} : vector<4x16x32xf32> to vector<1x16x32xf32>
    %61 = vector.shape_cast %60 : vector<1x16x32xf32> to vector<16x32xf32>
    %62 = vector.extract_strided_slice %57 {offsets = [2, 0, 0], sizes = [1, 16, 32], strides = [1, 1, 1]} : vector<4x16x32xf32> to vector<1x16x32xf32>
    %63 = vector.shape_cast %62 : vector<1x16x32xf32> to vector<16x32xf32>
    %64 = vector.extract_strided_slice %57 {offsets = [3, 0, 0], sizes = [1, 16, 32], strides = [1, 1, 1]} : vector<4x16x32xf32> to vector<1x16x32xf32>
    %65 = vector.shape_cast %64 : vector<1x16x32xf32> to vector<16x32xf32>
    %66 = tpu.concatenate %59, %61, %63, %65 in 1 : vector<16x32xf32>, vector<16x32xf32>, vector<16x32xf32>, vector<16x32xf32> -> vector<16x128xf32>
    %c0_21 = arith.constant 0 : index
    %c0_22 = arith.constant 0 : index
    %67 = vector.load %arg4[%c0_21, %c0_22] : memref<128x32xf32, #tpu.memory_space<vmem>>, vector<128x32xf32>
    %cst_23 = arith.constant dense<0.000000e+00> : vector<16x32xf32>
    %68 = tpu.matmul %66, %67, %cst_23 {dimension_numbers = #tpu.dot_dimension_numbers<[1], [0], [0], [1], [0, 0, 1, 1], [], []>} : vector<16x128xf32>, vector<128x32xf32>, vector<16x32xf32> -> vector<16x32xf32>
    %69 = vector.shape_cast %68 : vector<16x32xf32> to vector<1x1x16x32xf32>
    %c0_24 = arith.constant 0 : index
    %c0_25 = arith.constant 0 : index
    %c0_26 = arith.constant 0 : index
    %c0_27 = arith.constant 0 : index
    %70 = vector.load %arg5[%c0_24, %c0_25, %c0_26, %c0_27] : memref<1x1x16x32xf32, #tpu.memory_space<vmem>>, vector<1x1x16x32xf32>
    tpu.vector_store %arg5[%c0_24, %c0_25, %c0_26, %c0_27], %69 {strides = array<i32>} : memref<1x1x16x32xf32, #tpu.memory_space<vmem>>, vector<1x1x16x32xf32>,
    return
  }
  func.func @transform_0(%arg0: i32) -> (i32, i32, i32, i32) {
    %c0_i32 = arith.constant 0 : i32
    %c0_i32_0 = arith.constant 0 : i32
    %c0_i32_1 = arith.constant 0 : i32
    %c0_i32_2 = arith.constant 0 : i32
    return %arg0, %c0_i32, %c0_i32_0, %c0_i32_1 : i32, i32, i32, i32
  }
  func.func @transform_1(%arg0: i32) -> (i32, i32, i32) {
    %c0_i32 = arith.constant 0 : i32
    %c0_i32_0 = arith.constant 0 : i32
    %c0_i32_1 = arith.constant 0 : i32
    %c0_i32_2 = arith.constant 0 : i32
    return %c0_i32, %c0_i32_0, %c0_i32_1 : i32, i32, i32
  }
  func.func @transform_2(%arg0: i32) -> (i32, i32, i32) {
    %c0_i32 = arith.constant 0 : i32
    %c0_i32_0 = arith.constant 0 : i32
    %c0_i32_1 = arith.constant 0 : i32
    %c0_i32_2 = arith.constant 0 : i32
    return %c0_i32, %c0_i32_0, %c0_i32_1 : i32, i32, i32
  }
  func.func @transform_3(%arg0: i32) -> (i32, i32) {
    %c0_i32 = arith.constant 0 : i32
    %c0_i32_0 = arith.constant 0 : i32
    %c0_i32_1 = arith.constant 0 : i32
    return %c0_i32, %c0_i32_0 : i32, i32
  }
  func.func @transform_4(%arg0: i32) -> (i32, i32, i32, i32) {
    %c0_i32 = arith.constant 0 : i32
    %c0_i32_0 = arith.constant 0 : i32
    %c0_i32_1 = arith.constant 0 : i32
    %c0_i32_2 = arith.constant 0 : i32
    return %arg0, %c0_i32, %c0_i32_0, %c0_i32_1 : i32, i32, i32, i32
  }
}

</mosaic_0001>

<bundles_post_ra>
// kernel: _forward_nchw.1
= control target key start
LH: loop header
LB: loop body
LE: loop exit
PB: predicated region body
PF: predicated region fallthrough
CT: control target
= control target key end

     0   :  { %9 = vsyncpa [#allocation3], 0  ;;  %s3744_s0 = inlined_call_operand.vmem [shape: f32[2,16,16,32], index: 0, kind: input, shape index: {}]   ;;  %s3745_s1 = inlined_call_operand.vmem [shape: f32[2,288,32], index: 1, kind: input, shape index: {}]   ;;  %s3746_s2 = inlined_call_operand.vmem [shape: f32[2,1,32], index: 2, kind: input, shape index: {}]   ;;  %s3747_s3 = inlined_call_operand.vmem [shape: f32[128,32], index: 3, kind: input, shape index: {}]   ;;  %s3748_s4 = inlined_call_operand.hbm [shape: f32[2,1,16,32], index: 4, kind: output, shape index: {}]  }
   0x1   :  { %11 = vsyncpa [#allocation3 + $0x1], 0  ;;  %s2624_s15 = smov 0   ;;  %s2626_s16 = smov 0  }
   0x2   :  { %s2628_s17 = smov 0   ;;  %s2630_s18 = smov 0  }
   0x3 LB: > { %s2645_s19 = sadd.s32 4294967295, %s2590_s18   ;;  %s2040_s20 = sadd.s32 4294967294, %s2590_s18   ;;  %s2590_s18 = sphi %s2630_s18, %s3754_s18   ;;  %s2586_s17 = sphi %s2628_s17, %s3753_s17   ;;  %s2582_s16 = sphi %s2626_s16, %s3752_s16   ;;  %s2578_s15 = sphi %s2624_s15, %s3751_s15  }
   0x4   : > { %s2649_s21 = sadd.s32 1, %s2590_s18   ;;  %s113_s22 = sadd.s32 1, %s2586_s17 }
   0x5   : > { %s110_s23 = ssub.s32 %s2590_s18, %s2649_s21  ;;  %p123_p0 = scmp.ne.s32.totalorder %s2586_s17, %s2582_s16 }
   0x6   : > { %p111_p1 = scmp.eq.s32.totalorder %s110_s23, 0  ;;  %p124_p2 = scmp.eq.s32.totalorder %s2645_s19, 1 }
   0x7   : > { %p129_p3 = scmp.ne.s32.totalorder %s2582_s16, %s2578_s15  ;;  %p130_p4 = scmp.eq.s32.totalorder %s2040_s20, 1 }
   0x8   : > { %s2660_s24 = scalar_select %p111_p1, %s2586_s17, %s113_s22  }
   0x9   : > { %p2662_p5 = por %p124_p2, %p123_p0  ;;  %p2666_p6 = por %p130_p4, %p129_p3 }
   0xa   : > { %p2043_p7 = scmp.ge.s32.totalorder %s2590_s18, 1  ;;  %p165_p8 = scmp.lt.s32.totalorder %s2590_s18, 3 }
   0xc   : > { %p166_p9 = pnand %p2043_p7, %p165_p8 }
   0xd   : > { %p191_p10 = scmp.lt.s32.totalorder (!%p166_p9), %s2645_s19, 1  ;;  %s2592_s6 = smov (!%p166_p9), 64  }
   0xe   : > { %169 = sbr.rel (%p166_p9) target bundleno = 1350 (0x546), region = 36  ;;  %s2593_s7 = smov (!%p166_p9), 32  }
  0x13   : > { %s192_s27 = scalar_select %p191_p10, %s2645_s19, 1  ;;  %v2594_v4 = vmov 0.0   ;;  %v900_v33 = vld [vmem:[%s3745_s1 + $0xf8] sm:$0xff]  ;;  %v899_v35 = vld [vmem:[%s3745_s1 + $0xf0] sm:$0xff]  ;;  %v898_v37 = vld [vmem:[%s3745_s1 + $0xe8] sm:$0xff]  ;;  %vm363_vm0 = vcmask 261120  }
  0x14   : > { %v884_v34 = vld [vmem:[%s3745_s1 + $0x78] sm:$0xff]  ;;  %2117 = vmatprep.subr.mxu0 %v900_v33  ;;  %v883_v36 = vld [vmem:[%s3745_s1 + $0x70] sm:$0xff]  ;;  %v882_v38 = vld [vmem:[%s3745_s1 + $0x68] sm:$0xff]  ;;  %vm381_vm1 = vcmask 523264   ;;  %vm415_vm2 = vcmask 1046528   ;;  %vm513_vm3 = vcmask 1045504  }
  0x15   : > { %s2115_s28 = sshll.u32 %s192_s27, 8  ;;  %2118 = vmatpush3.msra.mxu0 %v884_v34  ;;  %v897_v39 = vld [vmem:[%s3745_s1 + $0xe0] sm:$0xff]  ;;  %v896_v41 = vld [vmem:[%s3745_s1 + $0xd8] sm:$0xff]  ;;  %v895_v45 = vld [vmem:[%s3745_s1 + $0xd0] sm:$0xff]  ;;  %vm619_vm4 = vcmask 785408   ;;  %vm716_vm5 = vcmask 1040384  }
  0x16   : > { %s2677_s5 = scalar_lea.vmem %s3744_s0, %s2115_s28  ;;  %2119 = vmatprep.subr.mxu0 %v899_v35  ;;  %v881_v40 = vld [vmem:[%s3745_s1 + $0x60] sm:$0xff]  ;;  %v880_v42 = vld [vmem:[%s3745_s1 + $0x58] sm:$0xff]  ;;  %v879_v51 = vld [vmem:[%s3745_s1 + $0x50] sm:$0xff]  ;;  %s2595_s28 = smov 96  }
  0x17   : > { %v2680_v0 = vld [vmem:[%s2677_s5 + $0x10] sm:$0xff]  ;;  %v196_v1 = vld [vmem:[%s2677_s5] sm:$0xff]  ;;  %v2687_v2 = vld [vmem:[%s2677_s5 + $0x18] sm:$0xff]  ;;  %2120 = vmatpush3.msra.mxu0 %v883_v36  ;;  %s2116_s27 = sshll.u32 %s2645_s19, 8  ;;  %s2596_s19 = smov [#allocation2]  }
  0x18   : > { %314 = vrot.lane.b32.xlu1 %v2680_v0, %s2592_s6  ;;  %247 = vrot.lane.b32.xlu0 %v196_v1, %s2593_s7  ;;  %v197_v3 = vld [vmem:[%s2677_s5 + $0x8] sm:$0xff]  ;;  %v200_v6 = vld [vmem:[%s2677_s5 + $0x20] sm:$0xff]  ;;  %s2534_s10 = sshll.u32 %s2596_s19, 4  ;;  %s2535_s10 = int_to_ptr.vmem [resolvable:$false] %s2534_s10 }
  0x19   : > { %v201_v5 = vld [vmem:[%s2677_s5 + $0x28] sm:$0xff]  ;;  %v2700_v7 = vld [vmem:[%s2677_s5 + $0x38] sm:$0xff]  ;;  %v2703_v8 = vld [vmem:[%s2677_s5 + $0x30] sm:$0xff]  ;;  %2121 = vmatprep.subr.mxu0 %v898_v37  ;;  %s2536_s11 = scalar_lea.vmem %s2535_s10, 512 }
  0x1a   : > { %v205_v9 = vld [vmem:[%s2677_s5 + $0x48] sm:$0xff]  ;;  %v204_v10 = vld [vmem:[%s2677_s5 + $0x40] sm:$0xff]  ;;  %v2714_v11 = vld [vmem:[%s2677_s5 + $0x58] sm:$0xff]  ;;  %2122 = vmatpush3.msra.mxu0 %v882_v38 }
  0x1b   : > { %v2717_v12 = vld [vmem:[%s2677_s5 + $0x50] sm:$0xff]  ;;  %v209_v13 = vld [vmem:[%s2677_s5 + $0x68] sm:$0xff]  ;;  %v208_v14 = vld [vmem:[%s2677_s5 + $0x60] sm:$0xff]  ;;  %2123 = vmatprep.subr.mxu0 %v897_v39 }
  0x1c   : > { %316 = vrot.lane.b32.xlu1 %v2687_v2, %s2592_s6  ;;  %249 = vrot.lane.b32.xlu0 %v197_v3, %s2593_s7  ;;  %v2728_v15 = vld [vmem:[%s2677_s5 + $0x78] sm:$0xff]  ;;  %v2731_v16 = vld [vmem:[%s2677_s5 + $0x70] sm:$0xff] }
  0x1d   : > { %v213_v17 = vld [vmem:[%s2677_s5 + $0x88] sm:$0xff]  ;;  %v212_v18 = vld [vmem:[%s2677_s5 + $0x80] sm:$0xff]  ;;  %v2742_v19 = vld [vmem:[%s2677_s5 + $0x98] sm:$0xff]  ;;  %2124 = vmatpush3.msra.mxu0 %v881_v40 }
  0x1e   : > { %v2745_v20 = vld [vmem:[%s2677_s5 + $0x90] sm:$0xff]  ;;  %v217_v21 = vld [vmem:[%s2677_s5 + $0xa8] sm:$0xff]  ;;  %v216_v22 = vld [vmem:[%s2677_s5 + $0xa0] sm:$0xff]  ;;  %2125 = vmatprep.subr.mxu0 %v896_v41 }
  0x1f   : > { %v2756_v23 = vld [vmem:[%s2677_s5 + $0xb8] sm:$0xff]  ;;  %v2759_v24 = vld [vmem:[%s2677_s5 + $0xb0] sm:$0xff]  ;;  %v221_v25 = vld [vmem:[%s2677_s5 + $0xc8] sm:$0xff]  ;;  %2126 = vmatpush3.msra.mxu0 %v880_v42 }
  0x20   : > { %312 = vrot.lane.b32.xlu1 %v2594_v4, %s2592_s6  ;;  %245 = vrot.lane.b32.xlu0 %v2594_v4, %s2593_s7  ;;  %v220_v26 = vld [vmem:[%s2677_s5 + $0xc0] sm:$0xff]  ;;  %v2770_v27 = vld [vmem:[%s2677_s5 + $0xd8] sm:$0xff] }
  0x21   : > { %v2773_v28 = vld [vmem:[%s2677_s5 + $0xd0] sm:$0xff]  ;;  %v225_v29 = vld [vmem:[%s2677_s5 + $0xe8] sm:$0xff]  ;;  %v224_v30 = vld [vmem:[%s2677_s5 + $0xe0] sm:$0xff]  ;;  %2127 = vmatprep.subr.mxu0 %v895_v45 }
  0x22   : > { %v227_v31 = vld [vmem:[%s2677_s5 + $0xf8] sm:$0xff]  ;;  %v226_v32 = vld [vmem:[%s2677_s5 + $0xf0] sm:$0xff]  ;;  %v894_v52 = vld [vmem:[%s3745_s1 + $0xc8] sm:$0xff]  ;;  %2128 = vmatpush3.msra.mxu0 %v879_v51  ;;  %s3701_s5 = scalar_lea.hbm %s3748_s4, %s2116_s27 }
  0x23   : > { %2129 = vmatprep.subr.mxu0 %v894_v52  ;;  %v878_v55 = vld [vmem:[%s3745_s1 + $0x48] sm:$0xff]  ;;  %v893_v56 = vld [vmem:[%s3745_s1 + $0xc0] sm:$0xff]  ;;  %v892_v58 = vld [vmem:[%s3745_s1 + $0xb8] sm:$0xff] }
  0x24   : > { %253 = vrot.lane.b32.xlu1 %v201_v5, %s2593_s7  ;;  %251 = vrot.lane.b32.xlu0 %v200_v6, %s2593_s7  ;;  %v877_v57 = vld [vmem:[%s3745_s1 + $0x40] sm:$0xff]  ;;  %v876_v59 = vld [vmem:[%s3745_s1 + $0x38] sm:$0xff] }
  0x25   : > { %2130 = vmatpush3.msra.mxu0 %v878_v55  ;;  %v891_v63 = vld [vmem:[%s3745_s1 + $0xb0] sm:$0xff]  ;;  %v890_v4 = vld [vmem:[%s3745_s1 + $0xa8] sm:$0xff]  ;;  %v885_v42 = vld [vmem:[%s3745_s1 + $0x80] sm:$0xff] }
  0x26   : > { %2131 = vmatprep.subr.mxu0 %v893_v56  ;;  %v875_v3 = vld [vmem:[%s3745_s1 + $0x30] sm:$0xff]  ;;  %v874_v5 = vld [vmem:[%s3745_s1 + $0x28] sm:$0xff]  ;;  %v869_v45 = vld [vmem:[%s3745_s1] sm:$0xff] }
  0x27   : > { %2132 = vmatpush3.msra.mxu0 %v877_v57  ;;  %v871_v33 = vld [vmem:[%s3745_s1 + $0x10] sm:$0xff]  ;;  %v886_v37 = vld [vmem:[%s3745_s1 + $0x88] sm:$0xff]  ;;  %v901_v51 = vld [vmem:[%s3745_s1 + $0x100] sm:$0xff] }
  0x28   : > { %320 = vrot.lane.b32.xlu1 %v2700_v7, %s2592_s6  ;;  %318 = vrot.lane.b32.xlu0 %v2703_v8, %s2592_s6  ;;  %v903_v38 = vld [vmem:[%s3745_s1 + $0x110] sm:$0xff]  ;;  %v870_v39 = vld [vmem:[%s3745_s1 + $0x8] sm:$0xff] }
  0x29   : > { %2133 = vmatprep.subr.mxu0 %v892_v58 }
  0x2a   : > { %2134 = vmatpush3.msra.mxu0 %v876_v59 }
  0x2b   : > { %2135 = vmatprep.subr.mxu0 %v891_v63 }
  0x2c   : > { %257 = vrot.lane.b32.xlu1 %v205_v9, %s2593_s7  ;;  %255 = vrot.lane.b32.xlu0 %v204_v10, %s2593_s7 }
  0x2d   : > { %2136 = vmatpush3.msra.mxu0 %v875_v3 }
  0x2e   : > { %2137 = vmatprep.subr.mxu0 %v890_v4 }
  0x2f   : > { %2138 = vmatpush3.msra.mxu0 %v874_v5 }
  0x30   : > { %324 = vrot.lane.b32.xlu1 %v2714_v11, %s2592_s6  ;;  %322 = vrot.lane.b32.xlu0 %v2717_v12, %s2592_s6 }
  0x34   : > { %261 = vrot.lane.b32.xlu1 %v209_v13, %s2593_s7  ;;  %259 = vrot.lane.b32.xlu0 %v208_v14, %s2593_s7  ;;  %v889_v13 = vld [vmem:[%s3745_s1 + $0xa0] sm:$0xff] }
  0x35   : > { %2139 = vmatprep.subr.mxu0 %v889_v13 }
  0x38   : > { %328 = vrot.lane.b32.xlu1 %v2728_v15, %s2592_s6  ;;  %326 = vrot.lane.b32.xlu0 %v2731_v16, %s2592_s6 }
  0x3c   : > { %265 = vrot.lane.b32.xlu1 %v213_v17, %s2593_s7  ;;  %263 = vrot.lane.b32.xlu0 %v212_v18, %s2593_s7 }
  0x40   : > { %332 = vrot.lane.b32.xlu1 %v2742_v19, %s2592_s6  ;;  %330 = vrot.lane.b32.xlu0 %v2745_v20, %s2592_s6 }
  0x44   : > { %269 = vrot.lane.b32.xlu1 %v217_v21, %s2593_s7  ;;  %267 = vrot.lane.b32.xlu0 %v216_v22, %s2593_s7 }
  0x48   : > { %336 = vrot.lane.b32.xlu1 %v2756_v23, %s2592_s6  ;;  %334 = vrot.lane.b32.xlu0 %v2759_v24, %s2592_s6 }
  0x4c   : > { %273 = vrot.lane.b32.xlu1 %v221_v25, %s2593_s7  ;;  %271 = vrot.lane.b32.xlu0 %v220_v26, %s2593_s7 }
  0x50   : > { %340 = vrot.lane.b32.xlu1 %v2770_v27, %s2592_s6  ;;  %338 = vrot.lane.b32.xlu0 %v2773_v28, %s2592_s6 }
  0x54   : > { %277 = vrot.lane.b32.xlu1 %v225_v29, %s2593_s7  ;;  %275 = vrot.lane.b32.xlu0 %v224_v30, %s2593_s7  ;;  %v888_v29 = vld [vmem:[%s3745_s1 + $0x98] sm:$0xff] }
  0x55   : > { %v872_v30 = vld [vmem:[%s3745_s1 + $0x18] sm:$0xff] }
  0x58   : > { %344 = vrot.lane.b32.xlu1 %v227_v31, %s2592_s6  ;;  %342 = vrot.lane.b32.xlu0 %v226_v32, %s2592_s6  ;;  %v887_v31 = vld [vmem:[%s3745_s1 + $0x90] sm:$0xff]  ;;  %v904_v32 = vld [vmem:[%s3745_s1 + $0x118] sm:$0xff] }
  0x59   : > { %2303 = vmatprep.subr.mxu1 %v904_v32 }
  0x5a   : > { %2304 = vmatpush3.msra.mxu1 %v904_v32 }
  0x5b   : > { %2305 = vmatprep.subr.mxu1 %v903_v38 }
  0x5c   : > { %2306 = vmatpush3.msra.mxu1 %v903_v38 }
  0x8a   : > { %v315_v43 = vpop.permute.xlu1 %314  ;;  %v248_v44 = vpop.permute.xlu0 %247 }
  0x8b   : > { %v365_v46 = vsel %vm363_vm0, 0.0, %v248_v44 }
  0x8c   : > { %v2822_v47 = vsel %vm381_vm1, %v365_v46, %v315_v43  ;;  %v902_v43 = vld [vmem:[%s3745_s1 + $0x108] sm:$0xff] }
  0x8d   : > { %v514_v48 = vrot.slane %v2822_v47, 2  ;;  %v416_v41 = vrot.slane %v2822_v47, 1  ;;  %2307 = vmatprep.subr.mxu1 %v902_v43 }
  0x8e   : > { %v317_v49 = vpop.permute.xlu1 %316  ;;  %v250_v50 = vpop.permute.xlu0 %249  ;;  %2308 = vmatpush3.msra.mxu1 %v902_v43 }
  0x8f   : > { %547 = vrot.lane.b32.xlu1 %v514_v48, %s2592_s6  ;;  %v366_v60 = vsel %vm363_vm0, 0.0, %v250_v50  ;;  %2309 = vmatprep.subr.mxu1 %v901_v51 }
  0x90   : > { %v2858_v1 = vsel %vm381_vm1, %v366_v60, %v317_v49  ;;  %2310 = vmatpush3.msra.mxu1 %v901_v51 }
  0x91   : > { %v417_v21 = vrot.slane %v2858_v1, 1  ;;  %v515_v57 = vrot.slane %v2858_v1, 2 }
  0x92   : > { %v2834_v53 = vpop.permute.xlu1 %312  ;;  %v2836_v54 = vpop.permute.xlu0 %245 }
  0x93   : > { %v364_v52 = vsel %vm363_vm0, 0.0, %v2836_v54 }
  0x94   : > { %v2947_v58 = vsel %vm381_vm1, %v364_v52, %v2834_v53 }
  0x95   : > { %v2959_v3 = vrot.slane %v2947_v58, 2 }
  0x96   : > { %v254_v61 = vpop.permute.xlu1 %253  ;;  %v252_v62 = vpop.permute.xlu0 %251 }
  0x97   : > { %v367_v6 = vsel %vm363_vm0, %v2680_v0, %v252_v62  ;;  %v873_v0 = vld [vmem:[%s3745_s1 + $0x20] sm:$0xff] }
  0x98   : > { %2140 = vmatpush3.msra.mxu0 %v873_v0 }
  0x99   : > { %2141 = vmatprep.subr.mxu0 %v888_v29 }
  0x9a   : > { %v321_v9 = vpop.permute.xlu1 %320  ;;  %v319_v10 = vpop.permute.xlu0 %318  ;;  %2142 = vmatpush3.msra.mxu0 %v872_v30 }
  0x9b   : > { %v2875_v14 = vsel %vm381_vm1, %v367_v6, %v319_v10  ;;  %2143 = vmatprep.subr.mxu0 %v887_v31 }
  0x9c   : > { %v419_v17 = vrot.slane %v2875_v14, 1  ;;  %v519_v18 = vrot.slane %v2875_v14, 2  ;;  %2144 = vmatpush3.msra.mxu0 %v871_v33 }
  0x9d   : > { %2145 = vmatprep.subr.mxu0 %v886_v37 }
  0x9e   : > { %v258_v22 = vpop.permute.xlu1 %257  ;;  %553 = vrot.lane.b32.xlu0 %v519_v18, %s2592_s6  ;;  %v256_v25 = vpop.permute.xlu0 %255  ;;  %v2435_v26 = vpack.i.bf16 %v419_v17, %v417_v21  ;;  %2146 = vmatpush3.msra.mxu0 %v870_v39 }
  0x9f   : > { %v369_v34 = vsel %vm363_vm0, %v2703_v8, %v256_v25  ;;  %v368_v8 = vsel %vm363_vm0, %v2687_v2, %v254_v61  ;;  %v418_v2 = vsel %vm415_vm2, %v416_v41, %v417_v21  ;;  %2147 = vmatprep.subr.mxu0 %v885_v42  ;;  %v370_v61 = vsel %vm363_vm0, %v2700_v7, %v258_v22 }
  0xa0   : > { %2436 = vrot.lane.b32.xlu1 %v2435_v26, %s2595_s28  ;;  %v2933_v46 = vsel %vm381_vm1, %v368_v8, %v321_v9  ;;  %2148 = vmatpush3.msra.mxu0 %v869_v45  ;;  %v2440_v55 = vpack.i.bf16 %v418_v2, %v416_v41  ;;  %v518_v21 = vsel %vm513_vm3, %v515_v57, %v2959_v3 }
  0xa1   : > { %v420_v56 = vrot.slane %v2933_v46, 1 }
  0xa2   : > { %v325_v35 = vpop.permute.xlu1 %324  ;;  %v323_v36 = vpop.permute.xlu0 %322 }
  0xa3   : > { %v2918_v40 = vsel %vm381_vm1, %v369_v34, %v323_v36  ;;  %v421_v53 = vsel %vm415_vm2, %v419_v17, %v420_v56  ;;  %v2968_v4 = vsel %vm381_vm1, %v370_v61, %v325_v35 }
  0xa4   : > { %v523_v44 = vrot.slane %v2918_v40, 2  ;;  %v2450_v10 = vpack.i.bf16 %v420_v56, %v421_v53  ;;  %v423_v13 = vrot.slane %v2968_v4, 1  ;;  %v422_v17 = vrot.slane %v2918_v40, 1 }
  0xa5   : > { %v524_v33 = vrot.slane %v2968_v4, 2 }
  0xa6   : > { %v262_v49 = vpop.permute.xlu1 %261  ;;  %559 = vrot.lane.b32.xlu0 %v523_v44, %s2592_s6  ;;  %v260_v50 = vpop.permute.xlu0 %259  ;;  %v424_v30 = vsel %vm415_vm2, %v422_v17, %v423_v13 }
  0xa7   : > { %v371_v59 = vsel %vm363_vm0, %v2717_v12, %v260_v50  ;;  %v516_v12 = vsel %vm513_vm3, %v514_v48, %v515_v57  ;;  %v372_v5 = vsel %vm363_vm0, %v2714_v11, %v262_v49  ;;  %v520_v48 = vrot.slane %v2933_v46, 2 }
  0xa8   : > { %v2455_v32 = vpack.i.bf16 %v424_v30, %v422_v17  ;;  %v525_v41 = vsel %vm513_vm3, %v523_v44, %v524_v33 }
  0xa9   : > { %v521_v29 = vsel %vm513_vm3, %v519_v18, %v520_v48  ;;  %v522_v34 = vsel %vm513_vm3, %v520_v48, %v2959_v3 }
  0xaa   : > { %v329_v60 = vpop.permute.xlu1 %328  ;;  %2441 = vrot.lane.b32.xlu0 %v2440_v55, %s2595_s28  ;;  %v327_v54 = vpop.permute.xlu0 %326 }
  0xab   : > { %v2955_v62 = vsel %vm381_vm1, %v371_v59, %v327_v54  ;;  %v2981_v0 = vsel %vm381_vm1, %v372_v5, %v329_v60 }
  0xac   : > { %v527_v63 = vrot.slane %v2955_v62, 2  ;;  %v425_v9 = vrot.slane %v2955_v62, 1  ;;  %v426_v25 = vrot.slane %v2981_v0, 1  ;;  %v528_v39 = vrot.slane %v2981_v0, 2 }
  0xae   : > { %549 = vrot.lane.b32.xlu0 %v516_v12, %s2592_s6  ;;  %565 = vrot.lane.b32.xlu1 %v527_v63, %s2592_s6  ;;  %v264_v7 = vpop.permute.xlu0 %263  ;;  %v266_v6 = vpop.permute.xlu1 %265  ;;  %v2445_v22 = vpack.i.bf16 %v425_v9, %v423_v13  ;;  %v427_v35 = vsel %vm415_vm2, %v425_v9, %v426_v25  ;;  %v530_v12 = vsel %vm513_vm3, %v528_v39, %v2959_v3 }
  0xaf   : > { %v373_v36 = vsel %vm363_vm0, %v2731_v16, %v264_v7  ;;  %v2460_v38 = vpack.i.bf16 %v426_v25, %v427_v35  ;;  %v374_v8 = vsel %vm363_vm0, %v2728_v15, %v266_v6  ;;  %v526_v15 = vsel %vm513_vm3, %v524_v33, %v2959_v3 }
  0xb2   : > { %551 = vrot.lane.b32.xlu0 %v518_v21, %s2592_s6  ;;  %2451 = vrot.lane.b32.xlu1 %v2450_v10, %s2595_s28  ;;  %v331_v11 = vpop.permute.xlu0 %330  ;;  %v333_v26 = vpop.permute.xlu1 %332 }
  0xb3   : > { %v3007_v42 = vsel %vm381_vm1, %v373_v36, %v331_v11  ;;  %v3014_v16 = vsel %vm381_vm1, %v374_v8, %v333_v26 }
  0xb4   : > { %v429_v45 = vrot.slane %v3014_v16, 1  ;;  %v428_v44 = vrot.slane %v3007_v42, 1  ;;  %v531_v51 = vrot.slane %v3007_v42, 2 }
  0xb6   : > { %555 = vrot.lane.b32.xlu1 %v521_v29, %s2592_s6  ;;  %2446 = vrot.lane.b32.xlu0 %v2445_v22, %s2595_s28  ;;  %v268_v31 = vpop.permute.xlu0 %267  ;;  %v270_v37 = vpop.permute.xlu1 %269  ;;  %v430_v56 = vsel %vm415_vm2, %v428_v44, %v429_v45 }
  0xb7   : > { %v375_v43 = vsel %vm363_vm0, %v2745_v20, %v268_v31  ;;  %v529_v20 = vsel %vm513_vm3, %v527_v63, %v528_v39  ;;  %v376_v55 = vsel %vm363_vm0, %v2742_v19, %v270_v37  ;;  %v2470_v61 = vpack.i.bf16 %v430_v56, %v428_v44 }
  0xb8   : > { %v532_v19 = vrot.slane %v3014_v16, 2 }
  0xba   : > { %2456 = vrot.lane.b32.xlu1 %v2455_v32, %s2595_s28  ;;  %557 = vrot.lane.b32.xlu0 %v522_v34, %s2592_s6  ;;  %v335_v18 = vpop.permute.xlu0 %334  ;;  %v337_v49 = vpop.permute.xlu1 %336  ;;  %v533_v10 = vsel %vm513_vm3, %v531_v51, %v532_v19  ;;  %v534_v11 = vsel %vm513_vm3, %v532_v19, %v2959_v3 }
  0xbb   : > { %v3021_v50 = vsel %vm381_vm1, %v375_v43, %v335_v18  ;;  %v3034_v60 = vsel %vm381_vm1, %v376_v55, %v337_v49 }
  0xbc   : > { %v535_v52 = vrot.slane %v3021_v50, 2  ;;  %v431_v54 = vrot.slane %v3021_v50, 1  ;;  %v432_v63 = vrot.slane %v3034_v60, 1  ;;  %v536_v26 = vrot.slane %v3034_v60, 2 }
  0xbe   : > { %561 = vrot.lane.b32.xlu1 %v525_v41, %s2592_s6  ;;  %2461 = vrot.lane.b32.xlu0 %v2460_v38, %s2595_s28  ;;  %v272_v2 = vpop.permute.xlu0 %271  ;;  %v274_v59 = vpop.permute.xlu1 %273  ;;  %v2465_v5 = vpack.i.bf16 %v431_v54, %v429_v45  ;;  %v433_v48 = vsel %vm415_vm2, %v431_v54, %v432_v63  ;;  %v537_v32 = vsel %vm513_vm3, %v535_v52, %v536_v26 }
  0xbf   : > { %v377_v53 = vsel %vm363_vm0, %v2759_v24, %v272_v2  ;;  %v378_v6 = vsel %vm363_vm0, %v2756_v23, %v274_v59  ;;  %v2475_v24 = vpack.i.bf16 %v432_v63, %v433_v48  ;;  %v538_v36 = vsel %vm513_vm3, %v536_v26, %v2959_v3 }
  0xc2   : > { %563 = vrot.lane.b32.xlu1 %v526_v15, %s2592_s6  ;;  %567 = vrot.lane.b32.xlu0 %v529_v20, %s2592_s6  ;;  %v339_v57 = vpop.permute.xlu0 %338  ;;  %v341_v9 = vpop.permute.xlu1 %340 }
  0xc3   : > { %v3050_v13 = vsel %vm381_vm1, %v377_v53, %v339_v57  ;;  %v3055_v17 = vsel %vm381_vm1, %v378_v6, %v341_v9 }
  0xc4   : > { %v435_v21 = vrot.slane %v3055_v17, 1  ;;  %v434_v23 = vrot.slane %v3050_v13, 1  ;;  %v539_v30 = vrot.slane %v3050_v13, 2  ;;  %v540_v37 = vrot.slane %v3055_v17, 2 }
  0xc6   : > { %571 = vrot.lane.b32.xlu1 %v531_v51, %s2592_s6  ;;  %577 = vrot.lane.b32.xlu0 %v535_v52, %s2592_s6  ;;  %v276_v7 = vpop.permute.xlu0 %275  ;;  %v278_v29 = vpop.permute.xlu1 %277  ;;  %v436_v33 = vsel %vm415_vm2, %v434_v23, %v435_v21  ;;  %v541_v41 = vsel %vm513_vm3, %v539_v30, %v540_v37 }
  0xc7   : > { %v379_v22 = vsel %vm363_vm0, %v2773_v28, %v276_v7  ;;  %v2485_v34 = vpack.i.bf16 %v436_v33, %v434_v23  ;;  %v380_v35 = vsel %vm363_vm0, %v2770_v27, %v278_v29  ;;  %v542_v27 = vsel %vm513_vm3, %v540_v37, %v2959_v3 }
  0xca   : > { %569 = vrot.lane.b32.xlu1 %v530_v12, %s2592_s6  ;;  %2471 = vrot.lane.b32.xlu0 %v2470_v61, %s2595_s28  ;;  %v343_v25 = vpop.permute.xlu0 %342  ;;  %v345_v18 = vpop.permute.xlu1 %344 }
  0xcb   : > { %v3068_v31 = vsel %vm381_vm1, %v379_v22, %v343_v25  ;;  %v3083_v38 = vsel %vm381_vm1, %v380_v35, %v345_v18 }
  0xcc   : > { %v437_v28 = vrot.slane %v3068_v31, 1  ;;  %v438_v8 = vrot.slane %v3083_v38, 1  ;;  %v543_v15 = vrot.slane %v3068_v31, 2  ;;  %v544_v2 = vrot.slane %v3083_v38, 2 }
  0xce   : > { %573 = vrot.lane.b32.xlu0 %v533_v10, %s2592_s6  ;;  %2466 = vrot.lane.b32.xlu1 %v2465_v5, %s2595_s28  ;;  %v2480_v39 = vpack.i.bf16 %v437_v28, %v435_v21  ;;  %v439_v43 = vsel %vm415_vm2, %v437_v28, %v438_v8  ;;  %v545_v45 = vsel %vm513_vm3, %v543_v15, %v544_v2 }
  0xcf   : > { %v546_v44 = vsel %vm513_vm3, %v544_v2, %v2959_v3 }
  0xd2   : > { %575 = vrot.lane.b32.xlu0 %v534_v11, %s2592_s6  ;;  %2476 = vrot.lane.b32.xlu1 %v2475_v24, %s2595_s28 }
  0xd6   : > { %579 = vrot.lane.b32.xlu1 %v537_v32, %s2592_s6  ;;  %583 = vrot.lane.b32.xlu0 %v539_v30, %s2592_s6 }
  0xda   : > { %581 = vrot.lane.b32.xlu0 %v538_v36, %s2592_s6  ;;  %2486 = vrot.lane.b32.xlu1 %v2485_v34, %s2595_s28 }
  0xde   : > { %585 = vrot.lane.b32.xlu1 %v541_v41, %s2592_s6  ;;  %2481 = vrot.lane.b32.xlu0 %v2480_v39, %s2595_s28 }
  0xe2   : > { %587 = vrot.lane.b32.xlu1 %v542_v27, %s2592_s6  ;;  %484 = vrot.lane.b32.xlu0 %v439_v43, %s2595_s28 }
  0xe6   : > { %589 = vrot.lane.b32.xlu1 %v543_v15, %s2592_s6  ;;  %591 = vrot.lane.b32.xlu0 %v545_v45, %s2592_s6 }
  0xea   : > { %486 = vrot.lane.b32.xlu1 %v438_v8, %s2595_s28  ;;  %593 = vrot.lane.b32.xlu0 %v546_v44, %s2592_s6 }
 0x101   : > { %v548_v20 = vpop.permute.xlu1 %547 }
 0x102   : > { %v723_v5 = vrot.slane %v548_v20, 7 }
 0x110   : > { %v554_v49 = vpop.permute.xlu0 %553 }
 0x111   : > { %v738_v36 = vrot.slane %v554_v49, 7 }
 0x112   : > { %v2437_v52 = vpop.permute.xlu1 %2436 }
 0x113   : > { %v2438_v63 = vunpack.i.l.bf16 %v2437_v52  ;;  %v2439_v10 = vunpack.i.h.bf16 %v2437_v52 }
 0x115   : > { %v622_v21 = vsel %vm619_vm4, %v2858_v1, %v2438_v63  ;;  %v623_v33 = vsel %vm619_vm4, %v2947_v58, %v2439_v10  ;;  %v647_v1 = vsel %vm381_vm1, %v2439_v10, %v554_v49 }
 0x116   : > { %v726_v18 = vrot.slane %v622_v21, 7  ;;  %v735_v45 = vrot.slane %v647_v1, 7  ;;  %v732_v44 = vrot.slane %v623_v33, 7 }
 0x118   : > { %v3103_v51 = vpop.permute.xlu0 %559 }
 0x119   : > { %v753_v10 = vrot.slane %v3103_v51, 7 }
 0x11c   : > { %v2442_v55 = vpop.permute.xlu0 %2441 }
 0x11d   : > { %v2444_v56 = vunpack.i.h.bf16 %v2442_v55  ;;  %v2443_v57 = vunpack.i.l.bf16 %v2442_v55 }
 0x11f   : > { %v621_v59 = vsel %vm619_vm4, %v2822_v47, %v2444_v56  ;;  %v620_v54 = vsel %vm619_vm4, %v2947_v58, %v2443_v57  ;;  %v644_v61 = vsel %vm381_vm1, %v2443_v57, %v548_v20 }
 0x120   : > { %v3110_v12 = vpop.permute.xlu1 %565  ;;  %v550_v19 = vpop.permute.xlu0 %549  ;;  %v717_v53 = vrot.slane %v620_v54, 7  ;;  %v718_v7 = vrot.slane %v621_v59, 7  ;;  %v720_v24 = vrot.slane %v644_v61, 7 }
 0x121   : > { %v645_v6 = vsel %vm381_vm1, %v2444_v56, %v550_v19  ;;  %v724_v9 = vrot.slane %v550_v19, 7 }
 0x122   : > { %v721_v48 = vrot.slane %v645_v6, 7  ;;  %v719_v25 = vsel %vm716_vm5, %v717_v53, %v718_v7 }
 0x123   : > { %v725_v47 = vsel %vm716_vm5, %v723_v5, %v724_v9 }
 0x124   : > { %v2452_v23 = vpop.permute.xlu1 %2451  ;;  %2311 = vmatprep.mubr.msk.f32.mxu1 %vm363_vm0, %v725_v47  ;;  %v552_v11 = vpop.permute.xlu0 %551  ;;  %v722_v22 = vsel %vm716_vm5, %v720_v24, %v721_v48 }
 0x125   : > { %v2454_v26 = vunpack.i.h.bf16 %v2452_v23  ;;  %v2453_v29 = vunpack.i.l.bf16 %v2452_v23  ;;  %v646_v30 = vsel %vm381_vm1, %v2438_v63, %v552_v11  ;;  %v730_v32 = vrot.slane %v552_v11, 7  ;;  %1008 = vmatprep.mubr.f32.mxu0 %v722_v22 }
 0x126   : > { %v728_v28 = vrot.slane %v646_v30, 7  ;;  %1009 = vmatmul.mubr.f32.vlgmr.msra.gmra.mxu0 %v719_v25 }
 0x127   : > { %v624_v34 = vsel %vm619_vm4, %v2875_v14, %v2453_v29  ;;  %v731_v35 = vsel %vm716_vm5, %v724_v9, %v730_v32  ;;  %v625_v27 = vsel %vm619_vm4, %v2933_v46, %v2454_v26  ;;  %v727_v14 = vsel %vm716_vm5, %v718_v7, %v726_v18 }
 0x128   : > { %v556_v37 = vpop.permute.xlu1 %555  ;;  %2312 = vmatmul.mubr.msk.f32.vlgmr.msra.gmra.mxu1 %vm363_vm0, %v731_v35  ;;  %v3127_v39 = vpop.permute.xlu0 %2446  ;;  %v729_v8 = vsel %vm716_vm5, %v721_v48, %v728_v28  ;;  %v733_v41 = vrot.slane %v624_v34, 7  ;;  %v741_v56 = vrot.slane %v625_v27, 7 }
 0x129   : > { %v648_v43 = vsel %vm381_vm1, %v2453_v29, %v556_v37  ;;  %v739_v15 = vrot.slane %v556_v37, 7  ;;  %1013 = vmatprep.mubr.f32.mxu0 %v729_v8  ;;  %v2449_v63 = vunpack.i.h.bf16 %v3127_v39  ;;  %v2448_v19 = vunpack.i.l.bf16 %v3127_v39 }
 0x12a   : > { %v736_v2 = vrot.slane %v648_v43, 7  ;;  %1014 = vmatmul.mubr.f32.gmra.mxu0 %v727_v14  ;;  %v734_v46 = vsel %vm716_vm5, %v732_v44, %v733_v41  ;;  %v742_v25 = vsel %vm716_vm5, %v733_v41, %v741_v56 }
 0x12b   : > { %v740_v49 = vsel %vm716_vm5, %v738_v36, %v739_v15  ;;  %v653_v30 = vsel %vm381_vm1, %v2449_v63, %v3110_v12  ;;  %v628_v32 = vsel %vm619_vm4, %v2968_v4, %v2448_v19 }
 0x12c   : > { %v2457_v20 = vpop.permute.xlu1 %2456  ;;  %2314 = vmatprep.mubr.msk.f32.mxu1 %vm363_vm0, %v740_v49  ;;  %v558_v52 = vpop.permute.xlu0 %557  ;;  %v737_v55 = vsel %vm716_vm5, %v735_v45, %v736_v2  ;;  %v765_v44 = vrot.slane %v653_v30, 7 }
 0x12d   : > { %v2459_v57 = vunpack.i.h.bf16 %v2457_v20  ;;  %v2458_v59 = vunpack.i.l.bf16 %v2457_v20  ;;  %v649_v54 = vsel %vm381_vm1, %v2454_v26, %v558_v52  ;;  %v745_v61 = vrot.slane %v558_v52, 7  ;;  %1018 = vmatprep.mubr.f32.mxu0 %v737_v55 }
 0x12e   : > { %v743_v53 = vrot.slane %v649_v54, 7  ;;  %1019 = vmatmul.mubr.f32.gmra.mxu0 %v734_v46 }
 0x12f   : > { %v627_v7 = vsel %vm619_vm4, %v2918_v40, %v2459_v57  ;;  %v626_v5 = vsel %vm619_vm4, %v2947_v58, %v2458_v59  ;;  %v650_v6 = vsel %vm381_vm1, %v2458_v59, %v3103_v51  ;;  %v746_v9 = vsel %vm716_vm5, %v739_v15, %v745_v61 }
 0x130   : > { %v562_v48 = vpop.permute.xlu1 %561  ;;  %2315 = vmatmul.mubr.msk.f32.gmra.mxu1 %vm363_vm0, %v746_v9  ;;  %v2462_v24 = vpop.permute.xlu0 %2461  ;;  %v744_v47 = vsel %vm716_vm5, %v736_v2, %v743_v53  ;;  %v747_v21 = vrot.slane %v626_v5, 7  ;;  %v748_v23 = vrot.slane %v627_v7, 7  ;;  %v750_v29 = vrot.slane %v650_v6, 7 }
 0x131   : > { %v651_v40 = vsel %vm381_vm1, %v2459_v57, %v562_v48  ;;  %v754_v11 = vrot.slane %v562_v48, 7  ;;  %v2463_v22 = vunpack.i.l.bf16 %v2462_v24  ;;  %1023 = vmatprep.mubr.f32.mxu0 %v744_v47  ;;  %v768_v51 = vrot.slane %v3110_v12, 7 }
 0x132   : > { %v751_v26 = vrot.slane %v651_v40, 7  ;;  %1024 = vmatmul.mubr.f32.gmra.mxu0 %v742_v25  ;;  %v2464_v28 = vunpack.i.h.bf16 %v2462_v24  ;;  %v749_v36 = vsel %vm716_vm5, %v747_v21, %v748_v23  ;;  %v756_v15 = vrot.slane %v628_v32, 7 }
 0x133   : > { %v755_v33 = vsel %vm716_vm5, %v753_v10, %v754_v11  ;;  %v630_v1 = vsel %vm619_vm4, %v2955_v62, %v2463_v22  ;;  %v629_v62 = vsel %vm619_vm4, %v2947_v58, %v2449_v63 }
 0x134   : > { %v564_v34 = vpop.permute.xlu1 %563  ;;  %2317 = vmatprep.mubr.msk.f32.mxu1 %vm363_vm0, %v755_v33  ;;  %v568_v35 = vpop.permute.xlu0 %567  ;;  %v752_v18 = vsel %vm716_vm5, %v750_v29, %v751_v26  ;;  %v763_v49 = vrot.slane %v630_v1, 7  ;;  %v631_v20 = vsel %vm619_vm4, %v2981_v0, %v2464_v28  ;;  %v757_v52 = vsel %vm716_vm5, %v748_v23, %v756_v15 }
 0x135   : > { %v652_v37 = vsel %vm381_vm1, %v2448_v19, %v564_v34  ;;  %v760_v12 = vrot.slane %v564_v34, 7  ;;  %v654_v39 = vsel %vm381_vm1, %v2463_v22, %v568_v35  ;;  %v769_v4 = vrot.slane %v568_v35, 7  ;;  %1028 = vmatprep.mubr.f32.mxu0 %v752_v18 }
 0x136   : > { %v758_v8 = vrot.slane %v652_v37, 7  ;;  %v766_v41 = vrot.slane %v654_v39, 7  ;;  %1029 = vmatmul.mubr.f32.gmra.mxu0 %v749_v36  ;;  %v762_v46 = vrot.slane %v629_v62, 7  ;;  %v771_v54 = vrot.slane %v631_v20, 7 }
 0x137   : > { %v761_v27 = vsel %vm716_vm5, %v754_v11, %v760_v12  ;;  %v770_v43 = vsel %vm716_vm5, %v768_v51, %v769_v4 }
 0x138   : > { %v572_v14 = vpop.permute.xlu1 %571  ;;  %2318 = vmatmul.mubr.msk.f32.gmra.mxu1 %vm363_vm0, %v761_v27  ;;  %v3171_v2 = vpop.permute.xlu0 %577  ;;  %v759_v45 = vsel %vm716_vm5, %v751_v26, %v758_v8  ;;  %v767_v55 = vsel %vm716_vm5, %v765_v44, %v766_v41  ;;  %v764_v59 = vsel %vm716_vm5, %v762_v46, %v763_v49  ;;  %v772_v47 = vsel %vm716_vm5, %v763_v49, %v771_v54 }
 0x139   : > { %1033 = vmatprep.mubr.f32.mxu0 %v759_v45  ;;  %2320 = vmatprep.mubr.msk.f32.mxu1 %vm363_vm0, %v770_v43  ;;  %v783_v40 = vrot.slane %v572_v14, 7 }
 0x13a   : > { %1034 = vmatmul.mubr.f32.gmra.mxu0 %v757_v52 }
 0x13b   : > { %1038 = vmatprep.mubr.f32.mxu0 %v767_v55 }
 0x13c   : > { %v570_v56 = vpop.permute.xlu1 %569  ;;  %v2472_v57 = vpop.permute.xlu0 %2471 }
 0x13d   : > { %v655_v61 = vsel %vm381_vm1, %v2464_v28, %v570_v56  ;;  %v775_v63 = vrot.slane %v570_v56, 7  ;;  %v2474_v19 = vunpack.i.h.bf16 %v2472_v57  ;;  %v2473_v0 = vunpack.i.l.bf16 %v2472_v57 }
 0x13e   : > { %v773_v53 = vrot.slane %v655_v61, 7  ;;  %1039 = vmatmul.mubr.f32.gmra.mxu0 %v764_v59 }
 0x13f   : > { %v633_v7 = vsel %vm619_vm4, %v3007_v42, %v2474_v19  ;;  %v632_v5 = vsel %vm619_vm4, %v2947_v58, %v2473_v0  ;;  %v656_v6 = vsel %vm381_vm1, %v2473_v0, %v572_v14  ;;  %v776_v9 = vsel %vm716_vm5, %v769_v4, %v775_v63 }
 0x140   : > { %v2467_v10 = vpop.permute.xlu1 %2466  ;;  %2321 = vmatmul.mubr.msk.f32.gmra.mxu1 %vm363_vm0, %v776_v9  ;;  %v574_v48 = vpop.permute.xlu0 %573  ;;  %v774_v24 = vsel %vm716_vm5, %v766_v41, %v773_v53  ;;  %v777_v21 = vrot.slane %v632_v5, 7  ;;  %v778_v23 = vrot.slane %v633_v7, 7  ;;  %v780_v26 = vrot.slane %v656_v6, 7 }
 0x141   : > { %v2468_v11 = vunpack.i.l.bf16 %v2467_v10  ;;  %v657_v42 = vsel %vm381_vm1, %v2474_v19, %v574_v48  ;;  %v784_v22 = vrot.slane %v574_v48, 7  ;;  %1043 = vmatprep.mubr.f32.mxu0 %v774_v24  ;;  %v2469_v29 = vunpack.i.h.bf16 %v2467_v10 }
 0x142   : > { %v781_v25 = vrot.slane %v657_v42, 7  ;;  %1044 = vmatmul.mubr.f32.gmra.mxu0 %v772_v47  ;;  %v779_v1 = vsel %vm716_vm5, %v777_v21, %v778_v23  ;;  %v798_v41 = vrot.slane %v3171_v2, 7 }
 0x143   : > { %v634_v51 = vsel %vm619_vm4, %v3014_v16, %v2468_v11  ;;  %v785_v30 = vsel %vm716_vm5, %v783_v40, %v784_v22  ;;  %v635_v16 = vsel %vm619_vm4, %v2947_v58, %v2469_v29  ;;  %v659_v39 = vsel %vm381_vm1, %v2469_v29, %v3171_v2 }
 0x144   : > { %v2477_v32 = vpop.permute.xlu1 %2476  ;;  %2323 = vmatprep.mubr.msk.f32.mxu1 %vm363_vm0, %v785_v30  ;;  %v576_v33 = vpop.permute.xlu0 %575  ;;  %v782_v28 = vsel %vm716_vm5, %v780_v26, %v781_v25  ;;  %v786_v34 = vrot.slane %v634_v51, 7  ;;  %v795_v20 = vrot.slane %v659_v39, 7  ;;  %v792_v2 = vrot.slane %v635_v16, 7 }
 0x145   : > { %v2479_v35 = vunpack.i.h.bf16 %v2477_v32  ;;  %v2478_v18 = vunpack.i.l.bf16 %v2477_v32  ;;  %v658_v36 = vsel %vm381_vm1, %v2468_v11, %v576_v33  ;;  %v790_v37 = vrot.slane %v576_v33, 7  ;;  %1048 = vmatprep.mubr.f32.mxu0 %v782_v28 }
 0x146   : > { %v788_v12 = vrot.slane %v658_v36, 7  ;;  %1049 = vmatmul.mubr.f32.gmra.mxu0 %v779_v1 }
 0x147   : > { %v636_v4 = vsel %vm619_vm4, %v3021_v50, %v2478_v18  ;;  %v791_v8 = vsel %vm716_vm5, %v784_v22, %v790_v37  ;;  %v637_v14 = vsel %vm619_vm4, %v3034_v60, %v2479_v35  ;;  %v787_v50 = vsel %vm716_vm5, %v778_v23, %v786_v34 }
 0x148   : > { %v580_v62 = vpop.permute.xlu1 %579  ;;  %2324 = vmatmul.mubr.msk.f32.gmra.mxu1 %vm363_vm0, %v791_v8  ;;  %v584_v27 = vpop.permute.xlu0 %583  ;;  %v789_v43 = vsel %vm716_vm5, %v781_v25, %v788_v12  ;;  %v793_v15 = vrot.slane %v636_v4, 7  ;;  %v801_v57 = vrot.slane %v637_v14, 7 }
 0x149   : > { %v660_v45 = vsel %vm381_vm1, %v2478_v18, %v580_v62  ;;  %v799_v44 = vrot.slane %v580_v62, 7  ;;  %1053 = vmatprep.mubr.f32.mxu0 %v789_v43  ;;  %v813_v6 = vrot.slane %v584_v27, 7 }
 0x14a   : > { %v796_v49 = vrot.slane %v660_v45, 7  ;;  %1054 = vmatmul.mubr.f32.gmra.mxu0 %v787_v50  ;;  %v794_v60 = vsel %vm716_vm5, %v792_v2, %v793_v15  ;;  %v802_v24 = vsel %vm716_vm5, %v793_v15, %v801_v57 }
 0x14b   : > { %v800_v52 = vsel %vm716_vm5, %v798_v41, %v799_v44 }
 0x14c   : > { %v2487_v55 = vpop.permute.xlu1 %2486  ;;  %2326 = vmatprep.mubr.msk.f32.mxu1 %vm363_vm0, %v800_v52  ;;  %v582_v46 = vpop.permute.xlu0 %581  ;;  %v797_v56 = vsel %vm716_vm5, %v795_v20, %v796_v49 }
 0x14d   : > { %v2489_v59 = vunpack.i.h.bf16 %v2487_v55  ;;  %v2488_v54 = vunpack.i.l.bf16 %v2487_v55  ;;  %v661_v61 = vsel %vm381_vm1, %v2479_v35, %v582_v46  ;;  %v805_v63 = vrot.slane %v582_v46, 7  ;;  %1058 = vmatprep.mubr.f32.mxu0 %v797_v56 }
 0x14e   : > { %v803_v19 = vrot.slane %v661_v61, 7  ;;  %1059 = vmatmul.mubr.f32.gmra.mxu0 %v794_v60 }
 0x14f   : > { %v639_v0 = vsel %vm619_vm4, %v3050_v13, %v2489_v59  ;;  %v638_v53 = vsel %vm619_vm4, %v2947_v58, %v2488_v54  ;;  %v662_v7 = vsel %vm381_vm1, %v2488_v54, %v584_v27  ;;  %v806_v5 = vsel %vm716_vm5, %v799_v44, %v805_v63  ;;  %v3258_v54 = vld [vmem:[%s3746_s2] ss:$0 sm:$0xff] }
 0x150   : > { %v586_v9 = vpop.permute.xlu1 %585  ;;  %2327 = vmatmul.mubr.msk.f32.gmra.mxu1 %vm363_vm0, %v806_v5  ;;  %v2482_v10 = vpop.permute.xlu0 %2481  ;;  %v804_v48 = vsel %vm716_vm5, %v796_v49, %v803_v19  ;;  %v807_v47 = vrot.slane %v638_v53, 7  ;;  %v808_v40 = vrot.slane %v639_v0, 7  ;;  %v810_v42 = vrot.slane %v662_v7, 7 }
 0x151   : > { %v663_v21 = vsel %vm381_vm1, %v2489_v59, %v586_v9  ;;  %v814_v13 = vrot.slane %v586_v9, 7  ;;  %v2483_v23 = vunpack.i.l.bf16 %v2482_v10  ;;  %1063 = vmatprep.mubr.f32.mxu0 %v804_v48  ;;  %v2484_v26 = vunpack.i.h.bf16 %v2482_v10 }
 0x152   : > { %v811_v11 = vrot.slane %v663_v21, 7  ;;  %1064 = vmatmul.mubr.f32.gmra.mxu0 %v802_v24  ;;  %v809_v34 = vsel %vm716_vm5, %v807_v47, %v808_v40 }
 0x153   : > { %v640_v22 = vsel %vm619_vm4, %v3055_v17, %v2483_v23  ;;  %v815_v25 = vsel %vm716_vm5, %v813_v6, %v814_v13  ;;  %v641_v18 = vsel %vm619_vm4, %v2947_v58, %v2484_v26 }
 0x154   : > { %v588_v29 = vpop.permute.xlu1 %587  ;;  %2329 = vmatprep.mubr.msk.f32.mxu1 %vm363_vm0, %v815_v25  ;;  %v485_v51 = vpop.permute.xlu0 %484  ;;  %v812_v30 = vsel %vm716_vm5, %v810_v42, %v811_v11  ;;  %v816_v32 = vrot.slane %v640_v22, 7  ;;  %v822_v15 = vrot.slane %v641_v18, 7 }
 0x155   : > { %v664_v33 = vsel %vm381_vm1, %v2483_v23, %v588_v29  ;;  %v820_v28 = vrot.slane %v588_v29, 7  ;;  %v642_v1 = vsel %vm619_vm4, %v3068_v31, %v485_v51  ;;  %1068 = vmatprep.mubr.f32.mxu0 %v812_v30 }
 0x156   : > { %v818_v17 = vrot.slane %v664_v33, 7  ;;  %1069 = vmatmul.mubr.f32.gmra.mxu0 %v809_v34  ;;  %v823_v36 = vrot.slane %v642_v1, 7  ;;  %v817_v39 = vsel %vm716_vm5, %v808_v40, %v816_v32 }
 0x157   : > { %v821_v35 = vsel %vm716_vm5, %v814_v13, %v820_v28 }
 0x158   : > { %v590_v37 = vpop.permute.xlu1 %589  ;;  %2330 = vmatmul.mubr.msk.f32.gmra.mxu1 %vm363_vm0, %v821_v35  ;;  %v592_v12 = vpop.permute.xlu0 %591  ;;  %v819_v16 = vsel %vm716_vm5, %v811_v11, %v818_v17  ;;  %v824_v2 = vsel %vm716_vm5, %v822_v15, %v823_v36 }
 0x159   : > { %v665_v31 = vsel %vm381_vm1, %v2484_v26, %v590_v37  ;;  %v828_v4 = vrot.slane %v590_v37, 7  ;;  %v666_v8 = vsel %vm381_vm1, %v485_v51, %v592_v12  ;;  %v829_v41 = vrot.slane %v592_v12, 7  ;;  %1073 = vmatprep.mubr.f32.mxu0 %v819_v16 }
 0x15a   : > { %v825_v62 = vrot.slane %v665_v31, 7  ;;  %v826_v27 = vrot.slane %v666_v8, 7  ;;  %1074 = vmatmul.mubr.f32.gmra.mxu0 %v817_v39 }
 0x15b   : > { %v830_v43 = vsel %vm716_vm5, %v828_v4, %v829_v41 }
 0x15c   : > { %v487_v14 = vpop.permute.xlu1 %486  ;;  %2332 = vmatprep.mubr.msk.f32.mxu1 %vm363_vm0, %v830_v43  ;;  %v594_v45 = vpop.permute.xlu0 %593  ;;  %v827_v44 = vsel %vm716_vm5, %v825_v62, %v826_v27 }
 0x15d   : > { %v643_v50 = vsel %vm619_vm4, %v3083_v38, %v487_v14  ;;  %v667_v49 = vsel %vm381_vm1, %v487_v14, %v594_v45  ;;  %v835_v20 = vrot.slane %v594_v45, 7  ;;  %1078 = vmatprep.mubr.f32.mxu0 %v827_v44 }
 0x15e   : > { %v831_v52 = vrot.slane %v643_v50, 7  ;;  %v833_v55 = vrot.slane %v667_v49, 7  ;;  %1079 = vmatmul.mubr.f32.gmra.mxu0 %v824_v2 }
 0x15f   : > { %v836_v46 = vsel %vm716_vm5, %v829_v41, %v835_v20 }
 0x160   : > { %2333 = vmatmul.mubr.msk.f32.gmra.mxu1 %vm363_vm0, %v836_v46  ;;  %v834_v56 = vsel %vm716_vm5, %v826_v27, %v833_v55  ;;  %v832_v60 = vsel %vm716_vm5, %v823_v36, %v831_v52 }
 0x161   : > { %1083 = vmatprep.mubr.f32.mxu0 %v834_v56 }
 0x162   : > { %1084 = vmatmul.mubr.f32.gmra.mxu0 %v832_v60 }
 0x1e6   : > { %v2149_v38 = vpop.f32.mrf.mxu0 }
 0x1e8   : > { %v2150_v57 = vpop.f32.mrf.mxu0  ;;  %v2313_v59 = vpop.f32.mrf.mxu1 }
 0x1e9   : > { %v2151_v61 = vadd.f32 %v2150_v57, %v2149_v38 }
 0x1ea   : > { %v2152_v63 = vpop.f32.mrf.mxu0  ;;  %v1155_v0 = vpop.f32.mrf.mxu1 }
 0x1eb   : > { %v1011_v19 = vadd.f32 %v2151_v61, %v3258_v54 }
 0x1ec   : > { %v2153_v53 = vpop.f32.mrf.mxu0 }
 0x1ed   : > { %v1156_v7 = vadd.f32 %v1155_v0, %v1011_v19  ;;  %v2154_v5 = vadd.f32 %v2153_v53, %v2152_v63 }
 0x1ee   : > { %v2155_v6 = vpop.f32.mrf.mxu0 }
 0x1ef   : > { %v1234_v9 = vmax.f32 %v1156_v7, 0.0  ;;  %v1016_v10 = vadd.f32 %v2154_v5, %v3258_v54 }
 0x1f0   : > { %v2156_v48 = vpop.f32.mrf.mxu0  ;;  %v2316_v24 = vpop.f32.mrf.mxu1 }
 0x1f1   : > { %v2157_v47 = vadd.f32 %v2156_v48, %v2155_v6  ;;  %1258 = vrot.lane.b32.xlu1 %v1234_v9, %s2593_s7  ;;  %v1161_v21 = vadd.f32 %v2313_v59, %v1016_v10 }
 0x1f2   : > { %v2158_v13 = vpop.f32.mrf.mxu0  ;;  %v1165_v11 = vpop.f32.mrf.mxu1 }
 0x1f3   : > { %v1021_v23 = vadd.f32 %v2157_v47, %v3258_v54  ;;  %v1235_v40 = vmax.f32 %v1161_v21, 0.0 }
 0x1f4   : > { %v2159_v42 = vpop.f32.mrf.mxu0 }
 0x1f5   : > { %v3264_v22 = vadd.f32 %v1165_v11, %v1021_v23  ;;  %v2160_v25 = vadd.f32 %v2159_v42, %v2158_v13  ;;  %1260 = vrot.lane.b32.xlu0 %v1235_v40, %s2593_s7 }
 0x1f6   : > { %v2161_v26 = vpop.f32.mrf.mxu0 }
 0x1f7   : > { %v1236_v29 = vmax.f32 %v3264_v22, 0.0  ;;  %v1026_v51 = vadd.f32 %v2160_v25, %v3258_v54 }
 0x1f8   : > { %v2162_v30 = vpop.f32.mrf.mxu0  ;;  %v2319_v32 = vpop.f32.mrf.mxu1 }
 0x1f9   : > { %v2163_v33 = vadd.f32 %v2162_v30, %v2161_v26  ;;  %1290 = vrot.lane.b32.xlu1 %v1236_v29, %s2592_s6  ;;  %v3272_v28 = vadd.f32 %v2316_v24, %v1026_v51 }
 0x1fa   : > { %v2164_v1 = vpop.f32.mrf.mxu0  ;;  %v1175_v35 = vpop.f32.mrf.mxu1 }
 0x1fb   : > { %v1031_v34 = vadd.f32 %v2163_v33, %v3258_v54  ;;  %v1237_v17 = vmax.f32 %v3272_v28, 0.0 }
 0x1fc   : > { %v2165_v18 = vpop.f32.mrf.mxu0 }
 0x1fd   : > { %v1176_v36 = vadd.f32 %v1175_v35, %v1031_v34  ;;  %v2166_v37 = vadd.f32 %v2165_v18, %v2164_v1  ;;  %1292 = vrot.lane.b32.xlu0 %v1237_v17, %s2592_s6 }
 0x1fe   : > { %v2167_v12 = vpop.f32.mrf.mxu0 }
 0x1ff   : > { %v1238_v16 = vmax.f32 %v1176_v36, 0.0  ;;  %v1036_v39 = vadd.f32 %v2166_v37, %v3258_v54 }
 0x200   : > { %v2168_v31 = vpop.f32.mrf.mxu0  ;;  %v2322_v4 = vpop.f32.mrf.mxu1 }
 0x201   : > { %v2169_v8 = vadd.f32 %v2168_v31, %v2167_v12  ;;  %1262 = vrot.lane.b32.xlu1 %v1238_v16, %s2593_s7  ;;  %v1181_v41 = vadd.f32 %v2319_v32, %v1036_v39 }
 0x202   : > { %v2170_v62 = vpop.f32.mrf.mxu0  ;;  %v1185_v15 = vpop.f32.mrf.mxu1 }
 0x203   : > { %v1041_v27 = vadd.f32 %v2169_v8, %v3258_v54  ;;  %v1239_v43 = vmax.f32 %v1181_v41, 0.0 }
 0x204   : > { %v2171_v14 = vpop.f32.mrf.mxu0 }
 0x205   : > { %v3282_v45 = vadd.f32 %v1185_v15, %v1041_v27  ;;  %v2172_v44 = vadd.f32 %v2171_v14, %v2170_v62  ;;  %1264 = vrot.lane.b32.xlu0 %v1239_v43, %s2593_s7 }
 0x206   : > { %v2173_v50 = vpop.f32.mrf.mxu0 }
 0x207   : > { %v1240_v49 = vmax.f32 %v3282_v45, 0.0  ;;  %v1046_v20 = vadd.f32 %v2172_v44, %v3258_v54 }
 0x208   : > { %v2174_v2 = vpop.f32.mrf.mxu0  ;;  %v2325_v52 = vpop.f32.mrf.mxu1 }
 0x209   : > { %v2175_v55 = vadd.f32 %v2174_v2, %v2173_v50  ;;  %1294 = vrot.lane.b32.xlu1 %v1240_v49, %s2592_s6  ;;  %v3290_v46 = vadd.f32 %v2322_v4, %v1046_v20 }
 0x20a   : > { %v2176_v56 = vpop.f32.mrf.mxu0  ;;  %v1195_v57 = vpop.f32.mrf.mxu1 }
 0x20b   : > { %v1051_v60 = vadd.f32 %v2175_v55, %v3258_v54  ;;  %v1241_v38 = vmax.f32 %v3290_v46, 0.0  ;;  %v2095_v55 = vld [vmem:[%s3745_s1 + $0x218] sm:$0xff] }
 0x20c   : > { %v2177_v59 = vpop.f32.mrf.mxu0  ;;  %2217 = vmatprep.subr.mxu1 %v2095_v55 }
 0x20d   : > { %v1196_v61 = vadd.f32 %v1195_v57, %v1051_v60  ;;  %v2178_v63 = vadd.f32 %v2177_v59, %v2176_v56  ;;  %1296 = vrot.lane.b32.xlu0 %v1241_v38, %s2592_s6  ;;  %v2079_v56 = vld [vmem:[%s3745_s1 + $0x198] sm:$0xff]  ;;  %v2094_v60 = vld [vmem:[%s3745_s1 + $0x210] sm:$0xff]  ;;  %v2093_v57 = vld [vmem:[%s3745_s1 + $0x208] sm:$0xff] }
 0x20e   : > { %v2179_v19 = vpop.f32.mrf.mxu0  ;;  %2218 = vmatpush3.msra.mxu1 %v2079_v56  ;;  %v2077_v59 = vld [vmem:[%s3745_s1 + $0x188] sm:$0xff] }
 0x20f   : > { %v1242_v0 = vmax.f32 %v1196_v61, 0.0  ;;  %v1056_v53 = vadd.f32 %v2178_v63, %v3258_v54  ;;  %2219 = vmatprep.subr.mxu1 %v2094_v60  ;;  %v2092_v61 = vld [vmem:[%s3745_s1 + $0x200] sm:$0xff] }
 0x210   : > { %v2180_v7 = vpop.f32.mrf.mxu0  ;;  %v2328_v5 = vpop.f32.mrf.mxu1  ;;  %v2076_v63 = vld [vmem:[%s3745_s1 + $0x180] sm:$0xff] }
 0x211   : > { %v2181_v6 = vadd.f32 %v2180_v7, %v2179_v19  ;;  %1266 = vrot.lane.b32.xlu1 %v1242_v0, %s2593_s7  ;;  %v1201_v9 = vadd.f32 %v2325_v52, %v1056_v53  ;;  %v2091_v19 = vld [vmem:[%s3745_s1 + $0x1f8] sm:$0xff]  ;;  %v2090_v53 = vld [vmem:[%s3745_s1 + $0x1f0] sm:$0xff] }
 0x212   : > { %v2182_v10 = vpop.f32.mrf.mxu0  ;;  %v1205_v47 = vpop.f32.mrf.mxu1  ;;  %v2075_v0 = vld [vmem:[%s3745_s1 + $0x178] sm:$0xff]  ;;  %v2074_v7 = vld [vmem:[%s3745_s1 + $0x170] sm:$0xff] }
 0x213   : > { %v1061_v48 = vadd.f32 %v2181_v6, %v3258_v54  ;;  %v1243_v24 = vmax.f32 %v1201_v9, 0.0  ;;  %v2073_v6 = vld [vmem:[%s3745_s1 + $0x168] sm:$0xff]  ;;  %v2088_v9 = vld [vmem:[%s3745_s1 + $0x1e0] sm:$0xff] }
 0x214   : > { %v2183_v21 = vpop.f32.mrf.mxu0 }
 0x215   : > { %v3300_v13 = vadd.f32 %v1205_v47, %v1061_v48  ;;  %v2184_v23 = vadd.f32 %v2183_v21, %v2182_v10  ;;  %1268 = vrot.lane.b32.xlu0 %v1243_v24, %s2593_s7  ;;  %v2072_v10 = vld [vmem:[%s3745_s1 + $0x160] sm:$0xff]  ;;  %v2087_v48 = vld [vmem:[%s3745_s1 + $0x1d8] sm:$0xff]  ;;  %v2086_v47 = vld [vmem:[%s3745_s1 + $0x1d0] sm:$0xff] }
 0x216   : > { %v2185_v40 = vpop.f32.mrf.mxu0  ;;  %v2071_v24 = vld [vmem:[%s3745_s1 + $0x158] sm:$0xff]  ;;  %v2070_v21 = vld [vmem:[%s3745_s1 + $0x150] sm:$0xff] }
 0x217   : > { %v1244_v11 = vmax.f32 %v3300_v13, 0.0  ;;  %v1066_v42 = vadd.f32 %v2184_v23, %v3258_v54  ;;  %v2085_v23 = vld [vmem:[%s3745_s1 + $0x1c8] sm:$0xff] }
 0x218   : > { %v2186_v25 = vpop.f32.mrf.mxu0  ;;  %v2331_v26 = vpop.f32.mrf.mxu1 }
 0x219   : > { %v2187_v51 = vadd.f32 %v2186_v25, %v2185_v40  ;;  %1298 = vrot.lane.b32.xlu1 %v1244_v11, %s2592_s6  ;;  %v3308_v30 = vadd.f32 %v2328_v5, %v1066_v42  ;;  %v2089_v5 = vld [vmem:[%s3745_s1 + $0x1e8] sm:$0xff]  ;;  %v2084_v42 = vld [vmem:[%s3745_s1 + $0x1c0] sm:$0xff] }
 0x21a   : > { %v2188_v32 = vpop.f32.mrf.mxu0  ;;  %v1215_v34 = vpop.f32.mrf.mxu1  ;;  %v2069_v40 = vld [vmem:[%s3745_s1 + $0x148] sm:$0xff] }
 0x21b   : > { %v1071_v33 = vadd.f32 %v2187_v51, %v3258_v54  ;;  %v1245_v1 = vmax.f32 %v3308_v30, 0.0  ;;  %v2083_v51 = vld [vmem:[%s3745_s1 + $0x1b8] sm:$0xff] }
 0x21c   : > { %v2189_v35 = vpop.f32.mrf.mxu0 }
 0x21d   : > { %v1216_v18 = vadd.f32 %v1215_v34, %v1071_v33  ;;  %v2190_v36 = vadd.f32 %v2189_v35, %v2188_v32  ;;  %1300 = vrot.lane.b32.xlu0 %v1245_v1, %s2592_s6  ;;  %v2067_v35 = vld [vmem:[%s3745_s1 + $0x138] sm:$0xff] }
 0x21e   : > { %v2191_v37 = vpop.f32.mrf.mxu0 }
 0x21f   : > { %v1246_v12 = vmax.f32 %v1216_v18, 0.0  ;;  %v1076_v16 = vadd.f32 %v2190_v36, %v3258_v54  ;;  %v2082_v36 = vld [vmem:[%s3745_s1 + $0x1b0] sm:$0xff] }
 0x220   : > { %v2192_v39 = vpop.f32.mrf.mxu0  ;;  %v2334_v31 = vpop.f32.mrf.mxu1 }
 0x221   : > { %v2193_v4 = vadd.f32 %v2192_v39, %v2191_v37  ;;  %1270 = vrot.lane.b32.xlu1 %v1246_v12, %s2593_s7  ;;  %v1221_v8 = vadd.f32 %v2331_v26, %v1076_v16  ;;  %v2068_v26 = vld [vmem:[%s3745_s1 + $0x140] sm:$0xff]  ;;  %v2066_v12 = vld [vmem:[%s3745_s1 + $0x130] sm:$0xff]  ;;  %v2081_v16 = vld [vmem:[%s3745_s1 + $0x1a8] sm:$0xff] }
 0x222   : > { %v2194_v41 = vpop.f32.mrf.mxu0  ;;  %v1225_v43 = vpop.f32.mrf.mxu1  ;;  %v2065_v39 = vld [vmem:[%s3745_s1 + $0x128] sm:$0xff] }
 0x223   : > { %v1081_v62 = vadd.f32 %v2193_v4, %v3258_v54  ;;  %v1247_v27 = vmax.f32 %v1221_v8, 0.0 }
 0x224   : > { %v2195_v15 = vpop.f32.mrf.mxu0 }
 0x225   : > { %v1226_v14 = vadd.f32 %v1225_v43, %v1081_v62  ;;  %v2196_v44 = vadd.f32 %v2195_v15, %v2194_v41  ;;  %1272 = vrot.lane.b32.xlu0 %v1247_v27, %s2593_s7  ;;  %v2064_v43 = vld [vmem:[%s3745_s1 + $0x120] sm:$0xff] }
 0x227   : > { %v1248_v50 = vmax.f32 %v1226_v14, 0.0  ;;  %v1086_v20 = vadd.f32 %v2196_v44, %v3258_v54  ;;  %v2078_v54 = vld [vmem:[%s3745_s1 + $0x190] sm:$0xff] }
 0x228   : > { %2220 = vmatpush3.msra.mxu1 %v2078_v54 }
 0x229   : > { %1302 = vrot.lane.b32.xlu1 %v1248_v50, %s2592_s6  ;;  %v1231_v2 = vadd.f32 %v2334_v31, %v1086_v20  ;;  %2221 = vmatprep.subr.mxu1 %v2093_v57  ;;  %v2080_v31 = vld [vmem:[%s3745_s1 + $0x1a0] sm:$0xff] }
 0x22a   : > { %2222 = vmatpush3.msra.mxu1 %v2077_v59 }
 0x22b   : > { %v1249_v52 = vmax.f32 %v1231_v2, 0.0  ;;  %2223 = vmatprep.subr.mxu1 %v2092_v61 }
 0x22c   : > { %2224 = vmatpush3.msra.mxu1 %v2076_v63 }
 0x22d   : > { %1304 = vrot.lane.b32.xlu0 %v1249_v52, %s2592_s6  ;;  %2225 = vmatprep.subr.mxu1 %v2091_v19 }
 0x22e   : > { %2226 = vmatpush3.msra.mxu1 %v2075_v0 }
 0x22f   : > { %2227 = vmatprep.subr.mxu1 %v2090_v53  ;;  %v3464_v53 = vld [vmem:[%s3745_s1 + $0x238] sm:$0xff] }
 0x230   : > { %2228 = vmatpush3.msra.mxu1 %v2074_v7 }
 0x231   : > { %2229 = vmatprep.subr.mxu1 %v2089_v5 }
 0x232   : > { %2230 = vmatpush3.msra.mxu1 %v2073_v6 }
 0x233   : > { %2231 = vmatprep.subr.mxu1 %v2088_v9 }
 0x234   : > { %2232 = vmatpush3.msra.mxu1 %v2072_v10 }
 0x235   : > { %2233 = vmatprep.subr.mxu1 %v2087_v48 }
 0x236   : > { %2234 = vmatpush3.msra.mxu1 %v2071_v24 }
 0x237   : > { %2235 = vmatprep.subr.mxu1 %v2086_v47 }
 0x238   : > { %2236 = vmatpush3.msra.mxu1 %v2070_v21 }
 0x239   : > { %2237 = vmatprep.subr.mxu1 %v2085_v23 }
 0x23a   : > { %2238 = vmatpush3.msra.mxu1 %v2069_v40 }
 0x23b   : > { %2239 = vmatprep.subr.mxu1 %v2084_v42 }
 0x23c   : > { %2240 = vmatpush3.msra.mxu1 %v2068_v26 }
 0x23d   : > { %2241 = vmatprep.subr.mxu1 %v2083_v51 }
 0x23e   : > { %2242 = vmatpush3.msra.mxu1 %v2067_v35 }
 0x23f   : > { %2243 = vmatprep.subr.mxu1 %v2082_v36 }
 0x240   : > { %2244 = vmatpush3.msra.mxu1 %v2066_v12 }
 0x241   : > { %2245 = vmatprep.subr.mxu1 %v2081_v16 }
 0x242   : > { %2246 = vmatpush3.msra.mxu1 %v2065_v39 }
 0x243   : > { %2247 = vmatprep.subr.mxu1 %v2080_v31 }
 0x244   : > { %2248 = vmatpush3.msra.mxu1 %v2064_v43 }
 0x245   : > { %2335 = vmatprep.subr.mxu1 %v3464_v53 }
 0x263   : > { %v1259_v25 = vpop.permute.xlu1 %1258 }
 0x264   : > { %v1314_v32 = vsel %vm363_vm0, 0.0, %v1259_v25 }
 0x267   : > { %v1261_v33 = vpop.permute.xlu0 %1260 }
 0x268   : > { %v1315_v4 = vsel %vm363_vm0, 0.0, %v1261_v33 }
 0x26b   : > { %v1291_v34 = vpop.permute.xlu1 %1290 }
 0x26c   : > { %v3402_v18 = vsel %vm381_vm1, %v1314_v32, %v1291_v34 }
 0x26d   : > { %v1386_v37 = vrot.slane %v3402_v18, 2  ;;  %v1338_v62 = vrot.slane %v3402_v18, 1 }
 0x26f   : > { %v1293_v8 = vpop.permute.xlu0 %1292  ;;  %1402 = vrot.lane.b32.xlu0 %v1386_v37, %s2592_s6 }
 0x270   : > { %v3423_v41 = vsel %vm381_vm1, %v1315_v4, %v1293_v8 }
 0x271   : > { %v1339_v27 = vrot.slane %v3423_v41, 1  ;;  %v1387_v44 = vrot.slane %v3423_v41, 2 }
 0x273   : > { %v1340_v15 = vsel %vm415_vm2, %v1338_v62, %v1339_v27  ;;  %v1263_v50 = vpop.permute.xlu1 %1262  ;;  %v1388_v20 = vsel %vm513_vm3, %v1386_v37, %v1387_v44  ;;  %v1389_v54 = vsel %vm513_vm3, %v1387_v44, %v2959_v3 }
 0x274   : > { %v2490_v14 = vpack.i.bf16 %v1340_v15, %v1338_v62  ;;  %v1316_v2 = vsel %vm363_vm0, %v1236_v29, %v1263_v50 }
 0x276   : > { %2491 = vrot.lane.b32.xlu1 %v2490_v14, %s2595_s28 }
 0x277   : > { %v1265_v52 = vpop.permute.xlu0 %1264 }
 0x278   : > { %v1317_v57 = vsel %vm363_vm0, %v1237_v17, %v1265_v52 }
 0x27a   : > { %1404 = vrot.lane.b32.xlu1 %v1388_v20, %s2592_s6 }
 0x27b   : > { %v1295_v55 = vpop.permute.xlu1 %1294 }
 0x27c   : > { %v3439_v56 = vsel %vm381_vm1, %v1316_v2, %v1295_v55 }
 0x27d   : > { %v1341_v60 = vrot.slane %v3439_v56, 1  ;;  %v1390_v61 = vrot.slane %v3439_v56, 2 }
 0x27e   : > { %1406 = vrot.lane.b32.xlu1 %v1389_v54, %s2592_s6  ;;  %v2098_v54 = vld [vmem:[%s3745_s1 + $0x230] sm:$0xff] }
 0x27f   : > { %v1297_v59 = vpop.permute.xlu0 %1296  ;;  %v2495_v22 = vpack.i.bf16 %v1341_v60, %v1339_v27 }
 0x280   : > { %v3449_v29 = vsel %vm381_vm1, %v1317_v57, %v1297_v59  ;;  %v2097_v59 = vld [vmem:[%s3745_s1 + $0x228] sm:$0xff] }
 0x281   : > { %v1342_v63 = vrot.slane %v3449_v29, 1  ;;  %v1391_v19 = vrot.slane %v3449_v29, 2  ;;  %2496 = vrot.lane.b32.xlu0 %v2495_v22, %s2595_s28 }
 0x282   : > { %1408 = vrot.lane.b32.xlu1 %v1390_v61, %s2592_s6 }
 0x283   : > { %v1343_v0 = vsel %vm415_vm2, %v1341_v60, %v1342_v63  ;;  %v1393_v17 = vsel %vm513_vm3, %v1391_v19, %v2959_v3  ;;  %v1267_v7 = vpop.permute.xlu1 %1266  ;;  %v1392_v5 = vsel %vm513_vm3, %v1390_v61, %v1391_v19  ;;  %v2096_v61 = vld [vmem:[%s3745_s1 + $0x220] sm:$0xff] }
 0x284   : > { %v2500_v28 = vpack.i.bf16 %v1342_v63, %v1343_v0  ;;  %v1318_v6 = vsel %vm363_vm0, %v1240_v49, %v1267_v7 }
 0x286   : > { %1412 = vrot.lane.b32.xlu1 %v1393_v17, %s2592_s6  ;;  %2501 = vrot.lane.b32.xlu0 %v2500_v28, %s2595_s28 }
 0x287   : > { %v1269_v9 = vpop.permute.xlu0 %1268 }
 0x288   : > { %v1319_v47 = vsel %vm363_vm0, %v1241_v38, %v1269_v9 }
 0x28a   : > { %1410 = vrot.lane.b32.xlu0 %v1392_v5, %s2592_s6 }
 0x28b   : > { %v1299_v10 = vpop.permute.xlu1 %1298 }
 0x28c   : > { %v3473_v48 = vsel %vm381_vm1, %v1318_v6, %v1299_v10 }
 0x28d   : > { %v1394_v24 = vrot.slane %v3473_v48, 2  ;;  %v1344_v45 = vrot.slane %v3473_v48, 1 }
 0x28f   : > { %v1301_v21 = vpop.permute.xlu0 %1300  ;;  %1414 = vrot.lane.b32.xlu1 %v1394_v24, %s2592_s6 }
 0x290   : > { %v3481_v23 = vsel %vm381_vm1, %v1319_v47, %v1301_v21 }
 0x291   : > { %v1345_v49 = vrot.slane %v3481_v23, 1  ;;  %v1395_v25 = vrot.slane %v3481_v23, 2 }
 0x293   : > { %v1346_v40 = vsel %vm415_vm2, %v1344_v45, %v1345_v49  ;;  %v1271_v46 = vpop.permute.xlu1 %1270  ;;  %v1396_v38 = vsel %vm513_vm3, %v1394_v24, %v1395_v25  ;;  %v1397_v35 = vsel %vm513_vm3, %v1395_v25, %v2959_v3 }
 0x294   : > { %v2505_v42 = vpack.i.bf16 %v1346_v40, %v1344_v45  ;;  %v1320_v26 = vsel %vm363_vm0, %v1244_v11, %v1271_v46 }
 0x296   : > { %2506 = vrot.lane.b32.xlu0 %v2505_v42, %s2595_s28 }
 0x297   : > { %v1273_v51 = vpop.permute.xlu0 %1272 }
 0x298   : > { %v1321_v36 = vsel %vm363_vm0, %v1245_v1, %v1273_v51 }
 0x29a   : > { %1416 = vrot.lane.b32.xlu0 %v1396_v38, %s2592_s6 }
 0x29b   : > { %v1303_v32 = vpop.permute.xlu1 %1302 }
 0x29c   : > { %v3494_v33 = vsel %vm381_vm1, %v1320_v26, %v1303_v32 }
 0x29d   : > { %v1347_v34 = vrot.slane %v3494_v33, 1  ;;  %v1398_v11 = vrot.slane %v3494_v33, 2 }
 0x29e   : > { %1418 = vrot.lane.b32.xlu0 %v1397_v35, %s2592_s6 }
 0x29f   : > { %v2510_v37 = vpack.i.bf16 %v1347_v34, %v1345_v49  ;;  %v1305_v13 = vpop.permute.xlu0 %1304 }
 0x2a0   : > { %v3505_v12 = vsel %vm381_vm1, %v1321_v36, %v1305_v13 }
 0x2a1   : > { %v1348_v16 = vrot.slane %v3505_v12, 1  ;;  %2511 = vrot.lane.b32.xlu1 %v2510_v37, %s2595_s28  ;;  %v1399_v31 = vrot.slane %v3505_v12, 2 }
 0x2a2   : > { %1420 = vrot.lane.b32.xlu0 %v1398_v11, %s2592_s6 }
 0x2a3   : > { %v1349_v39 = vsel %vm415_vm2, %v1347_v34, %v1348_v16  ;;  %v1400_v30 = vsel %vm513_vm3, %v1398_v11, %v1399_v31  ;;  %v1401_v1 = vsel %vm513_vm3, %v1399_v31, %v2959_v3 }
 0x2a5   : > { %1370 = vrot.lane.b32.xlu1 %v1349_v39, %s2595_s28 }
 0x2a6   : > { %1372 = vrot.lane.b32.xlu0 %v1348_v16, %s2595_s28 }
 0x2a9   : > { %1422 = vrot.lane.b32.xlu1 %v1400_v30, %s2592_s6 }
 0x2ad   : > { %1424 = vrot.lane.b32.xlu1 %v1401_v1, %s2592_s6 }
 0x2e1   : > { %v3519_v27 = vpop.permute.xlu0 %1402 }
 0x2e8   : > { %v2492_v4 = vpop.permute.xlu1 %2491 }
 0x2e9   : > { %v2494_v8 = vunpack.i.h.bf16 %v2492_v4  ;;  %v2493_v62 = vunpack.i.l.bf16 %v2492_v4 }
 0x2eb   : > { %v1439_v43 = vsel %vm619_vm4, %v3402_v18, %v2494_v8  ;;  %v1438_v15 = vsel %vm619_vm4, %v2947_v58, %v2493_v62  ;;  %v1450_v14 = vsel %vm381_vm1, %v2493_v62, %v3519_v27 }
 0x2ec   : > { %v3527_v44 = vpop.permute.xlu1 %1404  ;;  %v1487_v50 = vrot.slane %v1439_v43, 7  ;;  %v1486_v3 = vrot.slane %v1438_v15, 7  ;;  %v1489_v52 = vrot.slane %v1450_v14, 7 }
 0x2ed   : > { %v1451_v20 = vsel %vm381_vm1, %v2494_v8, %v3527_v44 }
 0x2ee   : > { %v1490_v2 = vrot.slane %v1451_v20, 7  ;;  %v1488_v18 = vsel %vm716_vm5, %v1486_v3, %v1487_v50 }
 0x2f0   : > { %v3531_v55 = vpop.permute.xlu1 %1406  ;;  %v1491_v60 = vsel %vm716_vm5, %v1489_v52, %v1490_v2 }
 0x2f1   : > { %1687 = vmatprep.mubr.f32.mxu1 %v1491_v60 }
 0x2f2   : > { %1688 = vmatmul.mubr.f32.vlgmr.msra.gmra.mxu1 %v1488_v18 }
 0x2f3   : > { %v2497_v57 = vpop.permute.xlu0 %2496  ;;  %2336 = vmatpush3.msra.mxu1 %v3464_v53 }
 0x2f4   : > { %v2498_v22 = vunpack.i.l.bf16 %v2497_v57  ;;  %2337 = vmatprep.subr.mxu1 %v2098_v54  ;;  %v3549_v0 = vpop.permute.xlu1 %1408  ;;  %v2499_v28 = vunpack.i.h.bf16 %v2497_v57 }
 0x2f5   : > { %2338 = vmatpush3.msra.mxu1 %v2098_v54 }
 0x2f6   : > { %v1440_v63 = vsel %vm619_vm4, %v3423_v41, %v2498_v22  ;;  %v1452_v19 = vsel %vm381_vm1, %v2498_v22, %v3531_v55  ;;  %2339 = vmatprep.subr.mxu1 %v2097_v59  ;;  %v1453_v10 = vsel %vm381_vm1, %v2499_v28, %v3549_v0  ;;  %v1441_v47 = vsel %vm619_vm4, %v2947_v58, %v2499_v28 }
 0x2f7   : > { %v1497_v17 = vrot.slane %v1452_v19, 7  ;;  %v1495_v53 = vrot.slane %v1440_v63, 7  ;;  %2340 = vmatpush3.msra.mxu1 %v2097_v59  ;;  %v1504_v25 = vrot.slane %v1453_v10, 7  ;;  %v1501_v38 = vrot.slane %v1441_v47, 7 }
 0x2f8   : > { %v2502_v7 = vpop.permute.xlu0 %2501  ;;  %2341 = vmatprep.subr.mxu1 %v2096_v61  ;;  %v3559_v21 = vpop.permute.xlu1 %1412  ;;  %v1493_v47 = vrot.slane %v3527_v44, 7  ;;  %v1507_v44 = vrot.slane %v3549_v0, 7 }
 0x2f9   : > { %v2504_v5 = vunpack.i.h.bf16 %v2502_v7  ;;  %v2503_v6 = vunpack.i.l.bf16 %v2502_v7  ;;  %v1498_v9 = vsel %vm716_vm5, %v1490_v2, %v1497_v17  ;;  %2342 = vmatpush3.msra.mxu1 %v2096_v61  ;;  %v1496_v41 = vsel %vm716_vm5, %v1487_v50, %v1495_v53 }
 0x2fa   : > { %1692 = vmatprep.mubr.f32.mxu1 %v1498_v9 }
 0x2fb   : > { %v1442_v24 = vsel %vm619_vm4, %v3439_v56, %v2503_v6  ;;  %1693 = vmatmul.mubr.f32.gmra.mxu1 %v1496_v41  ;;  %v1455_v49 = vsel %vm381_vm1, %v2504_v5, %v3559_v21  ;;  %v1443_v46 = vsel %vm619_vm4, %v3449_v29, %v2504_v5 }
 0x2fc   : > { %v3561_v45 = vpop.permute.xlu0 %1410  ;;  %v1502_v42 = vrot.slane %v1442_v24, 7  ;;  %v1512_v26 = vrot.slane %v1455_v49, 7  ;;  %v1510_v34 = vrot.slane %v1443_v46, 7 }
 0x2fd   : > { %v1454_v40 = vsel %vm381_vm1, %v2503_v6, %v3561_v45  ;;  %v1508_v46 = vrot.slane %v3561_v45, 7 }
 0x2fe   : > { %v1505_v56 = vrot.slane %v1454_v40, 7  ;;  %v1503_v32 = vsel %vm716_vm5, %v1501_v38, %v1502_v42  ;;  %v1511_v36 = vsel %vm716_vm5, %v1502_v42, %v1510_v34  ;;  %v1492_v40 = vrot.slane %v3519_v27, 7 }
 0x300   : > { %v1506_v51 = vsel %vm716_vm5, %v1504_v25, %v1505_v56  ;;  %v1513_v35 = vsel %vm716_vm5, %v1505_v56, %v1512_v26  ;;  %v1494_v56 = vsel %vm716_vm5, %v1492_v40, %v1493_v47  ;;  %v1514_v26 = vrot.slane %v3559_v21, 7 }
 0x301   : > { %1697 = vmatprep.mubr.f32.mxu1 %v1506_v51  ;;  %v3573_v29 = vpop.permute.xlu1 %1414 }
 0x302   : > { %1698 = vmatmul.mubr.f32.gmra.mxu1 %v1503_v32  ;;  %v1522_v45 = vrot.slane %v3573_v29, 7  ;;  %v1515_v32 = vsel %vm716_vm5, %v1508_v46, %v1514_v26 }
 0x303   : > { %1702 = vmatprep.mubr.f32.mxu1 %v1513_v35 }
 0x306   : > { %1703 = vmatmul.mubr.f32.gmra.mxu1 %v1511_v36 }
 0x308   : > { %v2507_v37 = vpop.permute.xlu0 %2506 }
 0x309   : > { %v2509_v13 = vunpack.i.h.bf16 %v2507_v37  ;;  %v2508_v11 = vunpack.i.l.bf16 %v2507_v37 }
 0x30b   : > { %v1445_v16 = vsel %vm619_vm4, %v3473_v48, %v2509_v13  ;;  %v1444_v39 = vsel %vm619_vm4, %v2947_v58, %v2508_v11  ;;  %v1456_v31 = vsel %vm381_vm1, %v2508_v11, %v3573_v29  ;;  %v1886_v11 = vld [vmem:[%s3747_s3 + $0x78] sm:$0xff]  ;;  %v1885_v29 = vld [vmem:[%s3747_s3 + $0x70] sm:$0xff] }
 0x30c   : > { %v3581_v30 = vpop.permute.xlu0 %1416  ;;  %v1516_v4 = vrot.slane %v1444_v39, 7  ;;  %v1517_v8 = vrot.slane %v1445_v16, 7  ;;  %v1519_v43 = vrot.slane %v1456_v31, 7  ;;  %2355 = vmatprep.subr.mxu0 %v1886_v11  ;;  %v1884_v16 = vld [vmem:[%s3747_s3 + $0x68] sm:$0xff]  ;;  %v1883_v39 = vld [vmem:[%s3747_s3 + $0x60] sm:$0xff]  ;;  %v1882_v31 = vld [vmem:[%s3747_s3 + $0x58] sm:$0xff] }
 0x30d   : > { %v1457_v1 = vsel %vm381_vm1, %v2509_v13, %v3581_v30  ;;  %v1523_v27 = vrot.slane %v3581_v30, 7  ;;  %2356 = vmatpush3.msra.mxu0 %v1886_v11  ;;  %v1881_v30 = vld [vmem:[%s3747_s3 + $0x50] sm:$0xff] }
 0x30e   : > { %v1520_v62 = vrot.slane %v1457_v1, 7  ;;  %v1518_v48 = vsel %vm716_vm5, %v1516_v4, %v1517_v8  ;;  %2357 = vmatprep.subr.mxu0 %v1885_v29  ;;  %v1880_v1 = vld [vmem:[%s3747_s3 + $0x48] sm:$0xff]  ;;  %v1879_v4 = vld [vmem:[%s3747_s3 + $0x40] sm:$0xff] }
 0x30f   : > { %v1524_v0 = vsel %vm716_vm5, %v1522_v45, %v1523_v27  ;;  %2358 = vmatpush3.msra.mxu0 %v1885_v29 }
 0x310   : > { %v3585_v15 = vpop.permute.xlu0 %1418  ;;  %v1521_v14 = vsel %vm716_vm5, %v1519_v43, %v1520_v62  ;;  %2359 = vmatprep.subr.mxu0 %v1884_v16  ;;  %v1876_v43 = vld [vmem:[%s3747_s3 + $0x28] sm:$0xff] }
 0x311   : > { %1707 = vmatprep.mubr.f32.mxu1 %v1521_v14  ;;  %v1529_v51 = vrot.slane %v3585_v15, 7  ;;  %2360 = vmatpush3.msra.mxu0 %v1884_v16  ;;  %v1874_v14 = vld [vmem:[%s3747_s3 + $0x18] sm:$0xff] }
 0x312   : > { %1708 = vmatmul.mubr.f32.gmra.mxu1 %v1518_v48  ;;  %2361 = vmatprep.subr.mxu0 %v1883_v39  ;;  %v1873_v48 = vld [vmem:[%s3747_s3 + $0x10] sm:$0xff] }
 0x313   : > { %v2512_v50 = vpop.permute.xlu1 %2511  ;;  %v1530_v37 = vsel %vm716_vm5, %v1523_v27, %v1529_v51  ;;  %2362 = vmatpush3.msra.mxu0 %v1883_v39 }
 0x314   : > { %v2513_v3 = vunpack.i.l.bf16 %v2512_v50  ;;  %v1421_v20 = vpop.permute.xlu0 %1420  ;;  %v2514_v2 = vunpack.i.h.bf16 %v2512_v50  ;;  %2363 = vmatprep.subr.mxu0 %v1882_v31 }
 0x315   : > { %v1537_v35 = vrot.slane %v1421_v20, 7  ;;  %2364 = vmatpush3.msra.mxu0 %v1882_v31 }
 0x316   : > { %v1446_v52 = vsel %vm619_vm4, %v3481_v23, %v2513_v3  ;;  %v1458_v60 = vsel %vm381_vm1, %v2513_v3, %v3585_v15  ;;  %v1459_v63 = vsel %vm381_vm1, %v2514_v2, %v1421_v20  ;;  %v1447_v23 = vsel %vm619_vm4, %v2947_v58, %v2514_v2  ;;  %2365 = vmatprep.subr.mxu0 %v1881_v30  ;;  %v1875_v15 = vld [vmem:[%s3747_s3 + $0x20] sm:$0xff] }
 0x317   : > { %v1371_v18 = vpop.permute.xlu1 %1370  ;;  %v1527_v54 = vrot.slane %v1458_v60, 7  ;;  %v1525_v57 = vrot.slane %v1446_v52, 7  ;;  %v1534_v7 = vrot.slane %v1459_v63, 7  ;;  %v1531_v6 = vrot.slane %v1447_v23, 7  ;;  %2366 = vmatpush3.msra.mxu0 %v1881_v30  ;;  %v2101_v20 = vld [vmem:[%s3746_s2 + $0x1] ss:$0 sm:$0xff] }
 0x318   : > { %v1448_v59 = vsel %vm619_vm4, %v3494_v33, %v1371_v18  ;;  %v1373_v19 = vpop.permute.xlu0 %1372  ;;  %2367 = vmatprep.subr.mxu0 %v1880_v1 }
 0x319   : > { %v1528_v22 = vsel %vm716_vm5, %v1520_v62, %v1527_v54  ;;  %v1526_v61 = vsel %vm716_vm5, %v1517_v8, %v1525_v57  ;;  %v1532_v17 = vrot.slane %v1448_v59, 7  ;;  %v1449_v33 = vsel %vm619_vm4, %v3505_v12, %v1373_v19  ;;  %2368 = vmatpush3.msra.mxu0 %v1880_v1  ;;  %v1878_v8 = vld [vmem:[%s3747_s3 + $0x38] sm:$0xff]  ;;  %v1877_v62 = vld [vmem:[%s3747_s3 + $0x30] sm:$0xff] }
 0x31a   : > { %1712 = vmatprep.mubr.f32.mxu1 %v1528_v22  ;;  %v1540_v10 = vrot.slane %v1449_v33, 7  ;;  %v1499_v12 = vrot.slane %v3531_v55, 7  ;;  %v1509_v55 = vsel %vm716_vm5, %v1507_v44, %v1508_v46  ;;  %2369 = vmatprep.subr.mxu0 %v1879_v4  ;;  %v1871_v44 = vld [vmem:[%s3747_s3] sm:$0xff] }
 0x31b   : > { %v1423_v28 = vpop.permute.xlu1 %1422  ;;  %1713 = vmatmul.mubr.f32.gmra.mxu1 %v1526_v61  ;;  %v1533_v58 = vsel %vm716_vm5, %v1531_v6, %v1532_v17  ;;  %2370 = vmatpush3.msra.mxu0 %v1879_v4 }
 0x31c   : > { %v1460_v53 = vsel %vm381_vm1, %v1371_v18, %v1423_v28  ;;  %v1541_v25 = vsel %vm716_vm5, %v1532_v17, %v1540_v10  ;;  %v1500_v38 = vsel %vm716_vm5, %v1493_v47, %v1499_v12  ;;  %v1538_v34 = vrot.slane %v1423_v28, 7  ;;  %2371 = vmatprep.subr.mxu0 %v1878_v8 }
 0x31d   : > { %v1535_v5 = vrot.slane %v1460_v53, 7  ;;  %2372 = vmatpush3.msra.mxu0 %v1878_v8 }
 0x31e   : > { %v1539_v21 = vsel %vm716_vm5, %v1537_v35, %v1538_v34  ;;  %2373 = vmatprep.subr.mxu0 %v1877_v62 }
 0x31f   : > { %v1425_v9 = vpop.permute.xlu1 %1424  ;;  %v1536_v41 = vsel %vm716_vm5, %v1534_v7, %v1535_v5  ;;  %2374 = vmatpush3.msra.mxu0 %v1877_v62 }
 0x320   : > { %v1461_v24 = vsel %vm381_vm1, %v1373_v19, %v1425_v9  ;;  %1717 = vmatprep.mubr.f32.mxu1 %v1536_v41  ;;  %v1544_v36 = vrot.slane %v1425_v9, 7  ;;  %2375 = vmatprep.subr.mxu0 %v1876_v43 }
 0x321   : > { %v1542_v49 = vrot.slane %v1461_v24, 7  ;;  %1718 = vmatmul.mubr.f32.gmra.mxu1 %v1533_v58  ;;  %2376 = vmatpush3.msra.mxu0 %v1876_v43  ;;  %v1872_v58 = vld [vmem:[%s3747_s3 + $0x8] sm:$0xff] }
 0x322   : > { %v1545_v13 = vsel %vm716_vm5, %v1538_v34, %v1544_v36  ;;  %2377 = vmatprep.subr.mxu0 %v1875_v15 }
 0x323   : > { %v1543_v42 = vsel %vm716_vm5, %v1535_v5, %v1542_v49  ;;  %2378 = vmatpush3.msra.mxu0 %v1875_v15 }
 0x324   : > { %1722 = vmatprep.mubr.f32.mxu1 %v1543_v42  ;;  %2379 = vmatprep.subr.mxu0 %v1874_v14 }
 0x325   : > { %1723 = vmatmul.mubr.f32.gmra.mxu1 %v1541_v25  ;;  %2380 = vmatpush3.msra.mxu0 %v1874_v14 }
 0x326   : > { %2343 = vmatprep.mubr.msk.f32.mxu1 %vm363_vm0, %v1494_v56  ;;  %2381 = vmatprep.subr.mxu0 %v1873_v48 }
 0x327   : > { %2382 = vmatpush3.msra.mxu0 %v1873_v48 }
 0x328   : > { %2383 = vmatprep.subr.mxu0 %v1872_v58 }
 0x329   : > { %2344 = vmatmul.mubr.msk.f32.vlgmr.msra.gmra.mxu1 %vm363_vm0, %v1500_v38  ;;  %2384 = vmatpush3.msra.mxu0 %v1872_v58 }
 0x32a   : > { %2346 = vmatprep.mubr.msk.f32.mxu1 %vm363_vm0, %v1509_v55  ;;  %2385 = vmatprep.subr.mxu0 %v1871_v44 }
 0x32b   : > { %2386 = vmatpush3.msra.mxu0 %v1871_v44 }
 0x32d   : > { %2347 = vmatmul.mubr.msk.f32.gmra.mxu1 %vm363_vm0, %v1515_v32 }
 0x32e   : > { %2349 = vmatprep.mubr.msk.f32.mxu1 %vm363_vm0, %v1524_v0 }
 0x331   : > { %2350 = vmatmul.mubr.msk.f32.gmra.mxu1 %vm363_vm0, %v1530_v37 }
 0x332   : > { %2352 = vmatprep.mubr.msk.f32.mxu1 %vm363_vm0, %v1539_v21 }
 0x335   : > { %2353 = vmatmul.mubr.msk.f32.gmra.mxu1 %vm363_vm0, %v1545_v13 }
 0x3b2   : > { %v2249_v50 = vpop.f32.mrf.mxu1 }
 0x3b4   : > { %v2250_v3 = vpop.f32.mrf.mxu1 }
 0x3b5   : > { %v2251_v2 = vadd.f32 %v2250_v3, %v2249_v50 }
 0x3b7   : > { %v1690_v52 = vadd.f32 %v2251_v2, %v2101_v20 }
 0x3bb   : > { %v2252_v60 = vpop.f32.mrf.mxu1 }
 0x3bd   : > { %v2253_v18 = vpop.f32.mrf.mxu1 }
 0x3be   : > { %v2254_v54 = vadd.f32 %v2253_v18, %v2252_v60 }
 0x3c0   : > { %v1695_v57 = vadd.f32 %v2254_v54, %v2101_v20 }
 0x3c2   : > { %v2255_v59 = vpop.f32.mrf.mxu1 }
 0x3c4   : > { %v2256_v22 = vpop.f32.mrf.mxu1 }
 0x3c5   : > { %v2257_v41 = vadd.f32 %v2256_v22, %v2255_v59 }
 0x3c6   : > { %v2258_v61 = vpop.f32.mrf.mxu1 }
 0x3c7   : > { %v1700_v46 = vadd.f32 %v2257_v41, %v2101_v20 }
 0x3c8   : > { %v2259_v63 = vpop.f32.mrf.mxu1 }
 0x3c9   : > { %v2260_v6 = vadd.f32 %v2259_v63, %v2258_v61 }
 0x3cb   : > { %v1705_v40 = vadd.f32 %v2260_v6, %v2101_v20 }
 0x3d2   : > { %v2261_v19 = vpop.f32.mrf.mxu1 }
 0x3d4   : > { %v2262_v23 = vpop.f32.mrf.mxu1 }
 0x3d5   : > { %v2263_v42 = vadd.f32 %v2262_v23, %v2261_v19 }
 0x3d7   : > { %v1710_v45 = vadd.f32 %v2263_v42, %v2101_v20 }
 0x3db   : > { %v2264_v28 = vpop.f32.mrf.mxu1 }
 0x3dd   : > { %v2265_v17 = vpop.f32.mrf.mxu1 }
 0x3de   : > { %v2266_v47 = vadd.f32 %v2265_v17, %v2264_v28 }
 0x3e0   : > { %v1715_v55 = vadd.f32 %v2266_v47, %v2101_v20 }
 0x3e1   : > { %v2267_v53 = vpop.f32.mrf.mxu1 }
 0x3e3   : > { %v2268_v7 = vpop.f32.mrf.mxu1 }
 0x3e4   : > { %v2269_v51 = vadd.f32 %v2268_v7, %v2267_v53 }
 0x3e5   : > { %v2270_v33 = vpop.f32.mrf.mxu1 }
 0x3e6   : > { %v1720_v39 = vadd.f32 %v2269_v51, %v2101_v20 }
 0x3e7   : > { %v2271_v5 = vpop.f32.mrf.mxu1 }
 0x3e8   : > { %v2272_v38 = vadd.f32 %v2271_v5, %v2270_v33 }
 0x3e9   : > { %v2345_v9 = vpop.f32.mrf.mxu1 }
 0x3ea   : > { %v1800_v10 = vadd.f32 %v2345_v9, %v1695_v57  ;;  %v1725_v21 = vadd.f32 %v2272_v38, %v2101_v20 }
 0x3eb   : > { %v1794_v24 = vpop.f32.mrf.mxu1 }
 0x3ec   : > { %v1795_v49 = vadd.f32 %v1794_v24, %v1690_v52  ;;  %v1834_v2 = vmax.f32 %v1800_v10, 0.0 }
 0x3ed   : > { %v2348_v12 = vpop.f32.mrf.mxu1 }
 0x3ee   : > { %v1810_v25 = vadd.f32 %v2348_v12, %v1705_v40  ;;  %v1833_v52 = vmax.f32 %v1795_v49, 0.0 }
 0x3ef   : > { %v1804_v56 = vpop.f32.mrf.mxu1 }
 0x3f0   : > { %v1805_v27 = vadd.f32 %v1804_v56, %v1700_v46  ;;  %v1836_v32 = vmax.f32 %v1810_v25, 0.0 }
 0x3f1   : > { %v2351_v26 = vpop.f32.mrf.mxu1 }
 0x3f2   : > { %v1835_v34 = vmax.f32 %v1805_v27, 0.0  ;;  %v1820_v0 = vadd.f32 %v2351_v26, %v1715_v55 }
 0x3f3   : > { %v1814_v35 = vpop.f32.mrf.mxu1 }
 0x3f4   : > { %v2515_v36 = vpack.i.bf16 %v1836_v32, %v1835_v34  ;;  %v1815_v37 = vadd.f32 %v1814_v35, %v1710_v45  ;;  %v1838_v11 = vmax.f32 %v1820_v0, 0.0 }
 0x3f5   : > { %v2354_v13 = vpop.f32.mrf.mxu1 }
 0x3f6   : > { %v1837_v29 = vmax.f32 %v1815_v37, 0.0  ;;  %v1830_v16 = vadd.f32 %v2354_v13, %v1725_v21  ;;  %2516 = vrot.lane.b32.xlu0 %v2515_v36, %s2593_s7 }
 0x3f7   : > { %v1824_v31 = vpop.f32.mrf.mxu1 }
 0x3f8   : > { %v2520_v30 = vpack.i.bf16 %v1838_v11, %v1837_v29  ;;  %v1825_v1 = vadd.f32 %v1824_v31, %v1720_v39  ;;  %v1840_v4 = vmax.f32 %v1830_v16, 0.0 }
 0x3fa   : > { %v1839_v8 = vmax.f32 %v1825_v1, 0.0  ;;  %2521 = vrot.lane.b32.xlu1 %v2520_v30, %s2592_s6  ;;  %s188_s6 = sand.u32 1, %s2582_s16  }
 0x3fb   : > { %s2044_s7 = sshll.u32 %s188_s6, 4  ;;  %s3704_s8 = scalar_lea.sflag [#allocation3], %s188_s6 }
 0x3fc   : > { %v2525_v62 = vpack.i.bf16 %v1840_v4, %v1839_v8 }
 0x3fe   : > { %2526 = vrot.lane.b32.xlu0 %v2525_v62, %s2595_s28  ;;  %s190_s28 = scalar_lea.vmem [#allocation2], %s2044_s7 }
 0x3ff   : > { %s1978_s23 = sshll.u32 %s190_s28, 4  ;;  %s3695_s23 = int_to_ptr.vmem [resolvable:$true] %s1978_s23 }
 0x400   : > { %s2530_s9 = scalar_lea.vmem %s3695_s23, 256  ;;  %p2537_p0 = scmp.lt.s32.totalorder %s3695_s23, %s2535_s10 }
 0x401   : > { %p2531_p11 = scmp.ne.s32.totalorder %s3695_s23, %s2530_s9  ;;  %p2538_p1 = scmp.lt.s32.totalorder %s2536_s11, %s2530_s9 }
 0x403   : > { %p2532_p12 = pnand %p2531_p11, %p2662_p5  ;;  %p2539_p2 = por %p2538_p1, %p2537_p0 }
 0x405   : > { %p2533_p13 = pneg %p2532_p12 }
 0x407   : > { %p2540_p3 = pnand %p2539_p2, %p2533_p13 }
 0x468   : > { %v2517_v43 = vpop.permute.xlu0 %2516 }
 0x469   : > { %v2519_v14 = vunpack.i.h.bf16 %v2517_v43  ;;  %v2518_v48 = vunpack.i.l.bf16 %v2517_v43 }
 0x46b   : > { %v1866_v60 = vsel %vm363_vm0, %v1834_v2, %v2519_v14  ;;  %v1865_v57 = vsel %vm363_vm0, %v1833_v52, %v2518_v48 }
 0x46c   : > { %v2522_v15 = vpop.permute.xlu1 %2521 }
 0x46d   : > { %v2524_v50 = vunpack.i.h.bf16 %v2522_v15  ;;  %v2523_v3 = vunpack.i.l.bf16 %v2522_v15 }
 0x46f   : > { %v1868_v59 = vsel %vm381_vm1, %v1866_v60, %v2524_v50  ;;  %v1867_v22 = vsel %vm381_vm1, %v1865_v57, %v2523_v3 }
 0x470   : > { %v2527_v20 = vpop.permute.xlu0 %2526 }
 0x471   : > { %v2529_v18 = vunpack.i.h.bf16 %v2527_v20  ;;  %v2528_v54 = vunpack.i.l.bf16 %v2527_v20 }
 0x473   : > { %v1870_v61 = vsel %vm619_vm4, %v1868_v59, %v2529_v18  ;;  %v1869_v63 = vsel %vm619_vm4, %v1867_v22, %v2528_v54 }
 0x474   : > { %2387 = vmatprep.mubr.f32.mxu0 %v1869_v63 }
 0x475   : > { %2388 = vmatmul.mubr.f32.vlgmr.msra.gmra.mxu0 %v1870_v61 }
 0x535   : > { %v2389_v19 = vpop.f32.mrf.mxu0 }
 0x536   : > { %1963 = vst.msk [vmem:[%s190_s28 + $0x8] sm:$0xff] %vm363_vm0, %v2389_v19 }
 0x537   : > { %v1953_v23 = vpop.f32.mrf.mxu0 }
 0x538   : > { %1962 = vst.msk [vmem:[%s190_s28] sm:$0xff] %vm363_vm0, %v1953_v23 }
 0x539   : > { %2543 = shalt.err (!%p2540_p3)
}
 0x53a   : > { %s2544_s12 = scalar_lea.hbm %s3701_s5, 256  ;;  %s2548_s20 = scalar_lea.hbm %s3748_s4, 512 }
 0x53b   : > { %p2545_p4 = scmp.ne.s32.totalorder %s3701_s5, %s2544_s12  ;;  %p2549_p9 = scmp.lt.s32.totalorder %s3701_s5, %s3748_s4 }
 0x53c   : > { %p2550_p10 = scmp.lt.s32.totalorder %s2548_s20, %s2544_s12 }
 0x53d   : > { %p2546_p7 = pnand %p2545_p4, %p2662_p5 }
 0x53e   : > { %p2551_p11 = por %p2550_p10, %p2549_p9 }
 0x53f   : > { %p2547_p8 = pneg %p2546_p7 }
 0x541   : > { %p2552_p12 = pnand %p2551_p11, %p2547_p8 }
 0x543   : > { %2555 = shalt.err (!%p2552_p12)
}
 0x544   : > { %s2597_s7 = smov 128   ;;  %s2598_s28 = smov 8  }
 0x545   : > { %2390 = dma.vmem_to_hbm [thread:$0]  (%p2662_p5), %s3695_s23, 256, %s3701_s5, %s3704_s8, %s2597_s7, %s2597_s7, %s2598_s28  }
 0x546 PF: > { %p2396_p13 = scmp.ge.s32.totalorder %s2590_s18, 2  ;;  %s1993_s27 = sand.u32 1, %s2578_s15  }
 0x547   : > { %s1994_s29 = scalar_lea.sflag [#allocation3], %s1993_s27 }
 0x548   : > { %p2393_p0 = pnand %p2396_p13, %p2666_p6 }
 0x54a   : > { %p2394_p1 = pneg %p2393_p0 }
 0x54c   : > { %2573 = dma.done.wait (%p2394_p1), %s1994_s29, 256  }
 0x54d   : > { %2575 = vsyncadd (%p2394_p1), %s1994_s29, 4294967040  ;;  %p14_p2 = scmp.ge.s32.totalorder %s2649_s21, 4   ;;  %s3751_s15 = smov %s2582_s16 }
 0x54e   : > { %s3752_s16 = smov %s2586_s17  ;;  %s3753_s17 = smov %s2660_s24 }
 0x54f   : > { %s3754_s18 = smov %s2649_s21  ;;  %16 = sbr.rel (!%p14_p2) target bundleno = 3 (0x3), region = 73 }
 0x554   :  { %1999 = vsyncpa [#allocation3], 1 }
 0x555   :  { %2001 = vsyncpa [#allocation3 + $0x1], 1 }

</bundles_post_ra>
